<compile_context>
chip_gen: v7x
topology: tpu7x:2x2x1
jax: 0.10.0
libtpu: 0.0.40
codegen_flags: <defaults>
</compile_context>

<pallas_src>
import functools

import jax
import jax.numpy as jnp
from jax import lax
from jax.experimental import pallas as pl
from jax.experimental.pallas import tpu as pltpu


def _gated_conv_kernel(x_ref, w_ref, b_ref, o_ref, *, kh, kw, wq, c_out, lm):
    """One image: accumulate kh*kw shifted fused matmuls, then sigmoid-gate.

    x_ref: (1, C_in, Lq)          zero-padded, spatially-flattened input
    w_ref: (kh*kw, 2*C_out, C_in) per-tap fused weights (conv rows, then gate)
    b_ref: (2*C_out, 1)           fused biases
    o_ref: (1, C_out, lm)         gated output, lm = Ho1 * Wq
    """
    acc = jnp.zeros((2 * c_out, lm), jnp.float32)
    for t in range(kh * kw):                       # static unroll over taps
        i, j = divmod(t, kw)
        s = i * wq + j                             # flat shift for tap (i, j)
        xs = x_ref[0, :, s:s + lm]                 # (C_in, lm) shifted view
        acc = acc + jnp.dot(
            w_ref[t], xs,
            preferred_element_type=jnp.float32,
            precision=jax.lax.Precision.HIGHEST)
    acc = acc + b_ref[...]
    conv = acc[:c_out]                             # sublane-aligned split
    gate = acc[c_out:]
    o_ref[0, :, :] = conv * jax.nn.sigmoid(gate)


@functools.partial(jax.jit, static_argnames=("stride", "padding"))
def gated_conv2d(x, w_conv, b_conv, w_gate, b_gate, *, stride=1, padding=0):
    """x: (N, C_in, H, W) f32; weights: (C_out, C_in, kh, kw); biases: (C_out,).

    Matches torch: conv(x) * sigmoid(gate_conv(x)); NCHW in / NCHW out.
    """
    N, C_in, H, W = x.shape
    C_out, _, kh, kw = w_conv.shape
    Hp, Wq = H + 2 * padding, W + 2 * padding
    Ho1 = Hp - kh + 1                      # stride-1 output height
    Ho = (Hp - kh) // stride + 1
    Wo = (Wq - kw) // stride + 1
    Lm = Ho1 * Wq                          # flat stride-1 output length (incl. garbage cols)
    Lq = (Hp + 1) * Wq                     # +1 slack row keeps the last shifted read in-bounds

    # Single spatial zero-pad (+1 slack row), then a free row-major flatten.
    xf = jnp.pad(x, ((0, 0), (0, 0), (padding, padding + 1), (padding, padding)))
    xf = xf.reshape(N, C_in, Lq)

    # Fuse conv + gate weights: rows [0, C_out) = conv, [C_out, 2*C_out) = gate.
    w_all = jnp.concatenate([w_conv, w_gate], axis=0)                 # (2*C_out, C_in, kh, kw)
    w_taps = jnp.transpose(w_all, (2, 3, 0, 1)).reshape(kh * kw, 2 * C_out, C_in)
    b_all = jnp.concatenate([b_conv, b_gate], axis=0).reshape(2 * C_out, 1)

    kernel = functools.partial(
        _gated_conv_kernel, kh=kh, kw=kw, wq=Wq, c_out=C_out, lm=Lm)

    K = kh * kw * C_in
    cost = pl.CostEstimate(
        flops=2 * N * Lm * K * (2 * C_out) + 4 * N * C_out * Lm,
        transcendentals=N * C_out * Lm,
        bytes_accessed=4 * (N * C_in * Lq + N * C_out * Lm
                            + kh * kw * 2 * C_out * C_in + 2 * C_out),
    )

    out_flat = pl.pallas_call(
        kernel,
        out_shape=jax.ShapeDtypeStruct((N, C_out, Lm), jnp.float32),
        grid_spec=pltpu.PrefetchScalarGridSpec(
            num_scalar_prefetch=0,
            grid=(N,),                         # one image per step; even grid splits across TCs
            in_specs=[
                pl.BlockSpec((1, C_in, Lq), lambda n: (n, 0, 0)),
                pl.BlockSpec((kh * kw, 2 * C_out, C_in), lambda n: (0, 0, 0)),
                pl.BlockSpec((2 * C_out, 1), lambda n: (0, 0)),
            ],
            out_specs=pl.BlockSpec((1, C_out, Lm), lambda n: (n, 0, 0)),
        ),
        compiler_params=pltpu.CompilerParams(
            dimension_semantics=("parallel",)),
        cost_estimate=cost,
    )(xf, w_taps, b_all)

    # Free reshape to (N, C_out, Ho1, Wq) — already channel-major, no transpose.
    # TODO(synk): stride>1 computes the dense stride-1 output and subsamples.
    out = out_flat.reshape(N, C_out, Ho1, Wq)
    out = out[:, :, ::stride, ::stride][:, :, :Ho, :Wo]
    return out


def _reference(x, w_conv, b_conv, w_gate, b_gate, stride, padding):
    """Pure-JAX reference mirroring torch.nn.Conv2d + sigmoid gating."""
    dn = lax.conv_dimension_numbers(x.shape, w_conv.shape, ("NCHW", "OIHW", "NCHW"))
    conv = lax.conv_general_dilated(
        x, w_conv, (stride, stride), [(padding, padding)] * 2,
        dimension_numbers=dn, precision=lax.Precision.HIGHEST,
    ) + b_conv[None, :, None, None]
    gate = lax.conv_general_dilated(
        x, w_gate, (stride, stride), [(padding, padding)] * 2,
        dimension_numbers=dn, precision=lax.Precision.HIGHEST,
    ) + b_gate[None, :, None, None]
    return conv * jax.nn.sigmoid(gate)


if __name__ == "__main__":
    # GatedConv2d(in_channels=4, out_channels=8, kernel_size=3, stride=1, padding=1)
    N, C_in, H, W = 2, 4, 16, 16
    C_out, kh, kw = 8, 3, 3
    stride, padding = 1, 1

    key = jax.random.PRNGKey(0)
    kx, kw1, kb1, kw2, kb2 = jax.random.split(key, 5)

    x = jax.random.normal(kx, (N, C_in, H, W), dtype=jnp.float32)
    # Deterministic init, roughly Conv2d default scale (uniform +/- 1/sqrt(fan_in)).
    fan_in = C_in * kh * kw
    bound = 1.0 / (fan_in ** 0.5)
    w_conv = jax.random.uniform(kw1, (C_out, C_in, kh, kw), jnp.float32, -bound, bound)
    b_conv = jax.random.uniform(kb1, (C_out,), jnp.float32, -bound, bound)
    w_gate = jax.random.uniform(kw2, (C_out, C_in, kh, kw), jnp.float32, -bound, bound)
    b_gate = jax.random.uniform(kb2, (C_out,), jnp.float32, -bound, bound)

    out = gated_conv2d(x, w_conv, b_conv, w_gate, b_gate,
                       stride=stride, padding=padding)
    out = jax.block_until_ready(out)

    ref = _reference(x, w_conv, b_conv, w_gate, b_gate, stride, padding)
    assert out.shape == (N, C_out, H, W), out.shape
    max_err = float(jnp.max(jnp.abs(out - ref)))
    assert jnp.allclose(out, ref, atol=1e-3, rtol=1e-3), max_err

    print("KERNEL_OK")
</pallas_src>

<mosaic_0001>
module attributes {stable_mosaic.version = 11 : i64} {
  func.func @_gated_conv_kernel(%arg0: i32, %arg1: memref<1x4x342xf32, #tpu.memory_space<vmem>>, %arg2: memref<9x16x4xf32, #tpu.memory_space<vmem>>, %arg3: memref<16x1xf32, #tpu.memory_space<vmem>>, %arg4: memref<1x8x288xf32, #tpu.memory_space<vmem>>) attributes {dimension_semantics = [#tpu.dimension_semantics<parallel>], iteration_bounds = array<i64: 2>, scalar_prefetch = 0 : i64, scratch_operands = 0 : i64, tpu.core_type = #tpu.core_type<tc>, window_params = [{transform_indices = @transform_0, window_bounds = array<i64: 1, 4, 342>}, {pipeline_mode = #tpu.pipeline_mode<synchronous>, transform_indices = @transform_1, window_bounds = array<i64: 9, 16, 4>}, {pipeline_mode = #tpu.pipeline_mode<synchronous>, transform_indices = @transform_2, window_bounds = array<i64: 16, 1>}, {transform_indices = @transform_3, window_bounds = array<i64: 1, 8, 288>}]} {
    %cst = arith.constant 0.000000e+00 : f32
    %0 = vector.broadcast %cst : f32 to vector<16x288xf32>
    %c0 = arith.constant 0 : index
    %c0_0 = arith.constant 0 : index
    %c0_1 = arith.constant 0 : index
    %1 = vector.load %arg1[%c0, %c0_0, %c0_1] : memref<1x4x342xf32, #tpu.memory_space<vmem>>, vector<1x4x288xf32>
    %2 = vector.shape_cast %1 : vector<1x4x288xf32> to vector<4x288xf32>
    %c0_2 = arith.constant 0 : index
    %c0_3 = arith.constant 0 : index
    %c0_4 = arith.constant 0 : index
    %3 = vector.load %arg2[%c0_2, %c0_3, %c0_4] : memref<9x16x4xf32, #tpu.memory_space<vmem>>, vector<1x16x4xf32>
    %4 = vector.shape_cast %3 : vector<1x16x4xf32> to vector<16x4xf32>
    %cst_5 = arith.constant dense<0.000000e+00> : vector<16x288xf32>
    %5 = tpu.matmul %4, %2, %cst_5 {dimension_numbers = #tpu.dot_dimension_numbers<[1], [0], [0], [1], [0, 0, 1, 1], [], []>, precision = #tpu.contract_precision<fp32>} : vector<16x4xf32>, vector<4x288xf32>, vector<16x288xf32> -> vector<16x288xf32>
    %6 = arith.addf %0, %5 : vector<16x288xf32>
    %c0_6 = arith.constant 0 : index
    %c0_7 = arith.constant 0 : index
    %c1 = arith.constant 1 : index
    %7 = vector.load %arg1[%c0_6, %c0_7, %c1] : memref<1x4x342xf32, #tpu.memory_space<vmem>>, vector<1x4x288xf32>
    %8 = vector.shape_cast %7 : vector<1x4x288xf32> to vector<4x288xf32>
    %c1_8 = arith.constant 1 : index
    %c0_9 = arith.constant 0 : index
    %c0_10 = arith.constant 0 : index
    %9 = vector.load %arg2[%c1_8, %c0_9, %c0_10] : memref<9x16x4xf32, #tpu.memory_space<vmem>>, vector<1x16x4xf32>
    %10 = vector.shape_cast %9 : vector<1x16x4xf32> to vector<16x4xf32>
    %cst_11 = arith.constant dense<0.000000e+00> : vector<16x288xf32>
    %11 = tpu.matmul %10, %8, %cst_11 {dimension_numbers = #tpu.dot_dimension_numbers<[1], [0], [0], [1], [0, 0, 1, 1], [], []>, precision = #tpu.contract_precision<fp32>} : vector<16x4xf32>, vector<4x288xf32>, vector<16x288xf32> -> vector<16x288xf32>
    %12 = arith.addf %6, %11 : vector<16x288xf32>
    %c0_12 = arith.constant 0 : index
    %c0_13 = arith.constant 0 : index
    %c2 = arith.constant 2 : index
    %13 = vector.load %arg1[%c0_12, %c0_13, %c2] : memref<1x4x342xf32, #tpu.memory_space<vmem>>, vector<1x4x288xf32>
    %14 = vector.shape_cast %13 : vector<1x4x288xf32> to vector<4x288xf32>
    %c2_14 = arith.constant 2 : index
    %c0_15 = arith.constant 0 : index
    %c0_16 = arith.constant 0 : index
    %15 = vector.load %arg2[%c2_14, %c0_15, %c0_16] : memref<9x16x4xf32, #tpu.memory_space<vmem>>, vector<1x16x4xf32>
    %16 = vector.shape_cast %15 : vector<1x16x4xf32> to vector<16x4xf32>
    %cst_17 = arith.constant dense<0.000000e+00> : vector<16x288xf32>
    %17 = tpu.matmul %16, %14, %cst_17 {dimension_numbers = #tpu.dot_dimension_numbers<[1], [0], [0], [1], [0, 0, 1, 1], [], []>, precision = #tpu.contract_precision<fp32>} : vector<16x4xf32>, vector<4x288xf32>, vector<16x288xf32> -> vector<16x288xf32>
    %18 = arith.addf %12, %17 : vector<16x288xf32>
    %c0_18 = arith.constant 0 : index
    %c0_19 = arith.constant 0 : index
    %c18 = arith.constant 18 : index
    %19 = vector.load %arg1[%c0_18, %c0_19, %c18] : memref<1x4x342xf32, #tpu.memory_space<vmem>>, vector<1x4x288xf32>
    %20 = vector.shape_cast %19 : vector<1x4x288xf32> to vector<4x288xf32>
    %c3 = arith.constant 3 : index
    %c0_20 = arith.constant 0 : index
    %c0_21 = arith.constant 0 : index
    %21 = vector.load %arg2[%c3, %c0_20, %c0_21] : memref<9x16x4xf32, #tpu.memory_space<vmem>>, vector<1x16x4xf32>
    %22 = vector.shape_cast %21 : vector<1x16x4xf32> to vector<16x4xf32>
    %cst_22 = arith.constant dense<0.000000e+00> : vector<16x288xf32>
    %23 = tpu.matmul %22, %20, %cst_22 {dimension_numbers = #tpu.dot_dimension_numbers<[1], [0], [0], [1], [0, 0, 1, 1], [], []>, precision = #tpu.contract_precision<fp32>} : vector<16x4xf32>, vector<4x288xf32>, vector<16x288xf32> -> vector<16x288xf32>
    %24 = arith.addf %18, %23 : vector<16x288xf32>
    %c0_23 = arith.constant 0 : index
    %c0_24 = arith.constant 0 : index
    %c19 = arith.constant 19 : index
    %25 = vector.load %arg1[%c0_23, %c0_24, %c19] : memref<1x4x342xf32, #tpu.memory_space<vmem>>, vector<1x4x288xf32>
    %26 = vector.shape_cast %25 : vector<1x4x288xf32> to vector<4x288xf32>
    %c4 = arith.constant 4 : index
    %c0_25 = arith.constant 0 : index
    %c0_26 = arith.constant 0 : index
    %27 = vector.load %arg2[%c4, %c0_25, %c0_26] : memref<9x16x4xf32, #tpu.memory_space<vmem>>, vector<1x16x4xf32>
    %28 = vector.shape_cast %27 : vector<1x16x4xf32> to vector<16x4xf32>
    %cst_27 = arith.constant dense<0.000000e+00> : vector<16x288xf32>
    %29 = tpu.matmul %28, %26, %cst_27 {dimension_numbers = #tpu.dot_dimension_numbers<[1], [0], [0], [1], [0, 0, 1, 1], [], []>, precision = #tpu.contract_precision<fp32>} : vector<16x4xf32>, vector<4x288xf32>, vector<16x288xf32> -> vector<16x288xf32>
    %30 = arith.addf %24, %29 : vector<16x288xf32>
    %c0_28 = arith.constant 0 : index
    %c0_29 = arith.constant 0 : index
    %c20 = arith.constant 20 : index
    %31 = vector.load %arg1[%c0_28, %c0_29, %c20] : memref<1x4x342xf32, #tpu.memory_space<vmem>>, vector<1x4x288xf32>
    %32 = vector.shape_cast %31 : vector<1x4x288xf32> to vector<4x288xf32>
    %c5 = arith.constant 5 : index
    %c0_30 = arith.constant 0 : index
    %c0_31 = arith.constant 0 : index
    %33 = vector.load %arg2[%c5, %c0_30, %c0_31] : memref<9x16x4xf32, #tpu.memory_space<vmem>>, vector<1x16x4xf32>
    %34 = vector.shape_cast %33 : vector<1x16x4xf32> to vector<16x4xf32>
    %cst_32 = arith.constant dense<0.000000e+00> : vector<16x288xf32>
    %35 = tpu.matmul %34, %32, %cst_32 {dimension_numbers = #tpu.dot_dimension_numbers<[1], [0], [0], [1], [0, 0, 1, 1], [], []>, precision = #tpu.contract_precision<fp32>} : vector<16x4xf32>, vector<4x288xf32>, vector<16x288xf32> -> vector<16x288xf32>
    %36 = arith.addf %30, %35 : vector<16x288xf32>
    %c0_33 = arith.constant 0 : index
    %c0_34 = arith.constant 0 : index
    %c36 = arith.constant 36 : index
    %37 = vector.load %arg1[%c0_33, %c0_34, %c36] : memref<1x4x342xf32, #tpu.memory_space<vmem>>, vector<1x4x288xf32>
    %38 = vector.shape_cast %37 : vector<1x4x288xf32> to vector<4x288xf32>
    %c6 = arith.constant 6 : index
    %c0_35 = arith.constant 0 : index
    %c0_36 = arith.constant 0 : index
    %39 = vector.load %arg2[%c6, %c0_35, %c0_36] : memref<9x16x4xf32, #tpu.memory_space<vmem>>, vector<1x16x4xf32>
    %40 = vector.shape_cast %39 : vector<1x16x4xf32> to vector<16x4xf32>
    %cst_37 = arith.constant dense<0.000000e+00> : vector<16x288xf32>
    %41 = tpu.matmul %40, %38, %cst_37 {dimension_numbers = #tpu.dot_dimension_numbers<[1], [0], [0], [1], [0, 0, 1, 1], [], []>, precision = #tpu.contract_precision<fp32>} : vector<16x4xf32>, vector<4x288xf32>, vector<16x288xf32> -> vector<16x288xf32>
    %42 = arith.addf %36, %41 : vector<16x288xf32>
    %c0_38 = arith.constant 0 : index
    %c0_39 = arith.constant 0 : index
    %c37 = arith.constant 37 : index
    %43 = vector.load %arg1[%c0_38, %c0_39, %c37] : memref<1x4x342xf32, #tpu.memory_space<vmem>>, vector<1x4x288xf32>
    %44 = vector.shape_cast %43 : vector<1x4x288xf32> to vector<4x288xf32>
    %c7 = arith.constant 7 : index
    %c0_40 = arith.constant 0 : index
    %c0_41 = arith.constant 0 : index
    %45 = vector.load %arg2[%c7, %c0_40, %c0_41] : memref<9x16x4xf32, #tpu.memory_space<vmem>>, vector<1x16x4xf32>
    %46 = vector.shape_cast %45 : vector<1x16x4xf32> to vector<16x4xf32>
    %cst_42 = arith.constant dense<0.000000e+00> : vector<16x288xf32>
    %47 = tpu.matmul %46, %44, %cst_42 {dimension_numbers = #tpu.dot_dimension_numbers<[1], [0], [0], [1], [0, 0, 1, 1], [], []>, precision = #tpu.contract_precision<fp32>} : vector<16x4xf32>, vector<4x288xf32>, vector<16x288xf32> -> vector<16x288xf32>
    %48 = arith.addf %42, %47 : vector<16x288xf32>
    %c0_43 = arith.constant 0 : index
    %c0_44 = arith.constant 0 : index
    %c38 = arith.constant 38 : index
    %49 = vector.load %arg1[%c0_43, %c0_44, %c38] : memref<1x4x342xf32, #tpu.memory_space<vmem>>, vector<1x4x288xf32>
    %50 = vector.shape_cast %49 : vector<1x4x288xf32> to vector<4x288xf32>
    %c8 = arith.constant 8 : index
    %c0_45 = arith.constant 0 : index
    %c0_46 = arith.constant 0 : index
    %51 = vector.load %arg2[%c8, %c0_45, %c0_46] : memref<9x16x4xf32, #tpu.memory_space<vmem>>, vector<1x16x4xf32>
    %52 = vector.shape_cast %51 : vector<1x16x4xf32> to vector<16x4xf32>
    %cst_47 = arith.constant dense<0.000000e+00> : vector<16x288xf32>
    %53 = tpu.matmul %52, %50, %cst_47 {dimension_numbers = #tpu.dot_dimension_numbers<[1], [0], [0], [1], [0, 0, 1, 1], [], []>, precision = #tpu.contract_precision<fp32>} : vector<16x4xf32>, vector<4x288xf32>, vector<16x288xf32> -> vector<16x288xf32>
    %54 = arith.addf %48, %53 : vector<16x288xf32>
    %c0_48 = arith.constant 0 : index
    %c0_49 = arith.constant 0 : index
    %55 = vector.load %arg3[%c0_48, %c0_49] : memref<16x1xf32, #tpu.memory_space<vmem>>, vector<16x1xf32>
    %56 = vector.broadcast %55 : vector<16x1xf32> to vector<16x288xf32>
    %57 = arith.addf %54, %56 : vector<16x288xf32>
    %58 = vector.extract_strided_slice %57 {offsets = [0, 0], sizes = [8, 288], strides = [1, 1]} : vector<16x288xf32> to vector<8x288xf32>
    %59 = vector.extract_strided_slice %57 {offsets = [8, 0], sizes = [8, 288], strides = [1, 1]} : vector<16x288xf32> to vector<8x288xf32>
    %60 = arith.negf %59 : vector<8x288xf32>
    %61 = math.exp %60 : vector<8x288xf32>
    %cst_50 = arith.constant 1.000000e+00 : f32
    %62 = vector.broadcast %cst_50 : f32 to vector<8x288xf32>
    %63 = arith.addf %62, %61 : vector<8x288xf32>
    %64 = arith.divf %62, %63 : vector<8x288xf32>
    %65 = arith.mulf %58, %64 : vector<8x288xf32>
    %c0_51 = arith.constant 0 : index
    %c0_52 = arith.constant 0 : index
    %c0_53 = arith.constant 0 : index
    %66 = vector.load %arg4[%c0_51, %c0_52, %c0_53] : memref<1x8x288xf32, #tpu.memory_space<vmem>>, vector<1x8x288xf32>
    %67 = vector.shape_cast %66 : vector<1x8x288xf32> to vector<8x288xf32>
    %68 = vector.shape_cast %65 : vector<8x288xf32> to vector<1x8x288xf32>
    tpu.vector_store %arg4[%c0_51, %c0_52, %c0_53], %68 {strides = array<i32>} : memref<1x8x288xf32, #tpu.memory_space<vmem>>, vector<1x8x288xf32>,
    return
  }
  func.func @transform_0(%arg0: i32) -> (i32, i32, i32) {
    %c0_i32 = arith.constant 0 : i32
    %c0_i32_0 = arith.constant 0 : i32
    %c0_i32_1 = arith.constant 0 : i32
    return %arg0, %c0_i32, %c0_i32_0 : i32, i32, i32
  }
  func.func @transform_1(%arg0: i32) -> (i32, i32, i32) {
    %c0_i32 = arith.constant 0 : i32
    %c0_i32_0 = arith.constant 0 : i32
    %c0_i32_1 = arith.constant 0 : i32
    %c0_i32_2 = arith.constant 0 : i32
    return %c0_i32, %c0_i32_0, %c0_i32_1 : i32, i32, i32
  }
  func.func @transform_2(%arg0: i32) -> (i32, i32) {
    %c0_i32 = arith.constant 0 : i32
    %c0_i32_0 = arith.constant 0 : i32
    %c0_i32_1 = arith.constant 0 : i32
    return %c0_i32, %c0_i32_0 : i32, i32
  }
  func.func @transform_3(%arg0: i32) -> (i32, i32, i32) {
    %c0_i32 = arith.constant 0 : i32
    %c0_i32_0 = arith.constant 0 : i32
    %c0_i32_1 = arith.constant 0 : i32
    return %arg0, %c0_i32, %c0_i32_0 : i32, i32, i32
  }
}

</mosaic_0001>

<bundles_post_ra>
// kernel: gated_conv2d.1
= control target key start
LH: loop header
LB: loop body
LE: loop exit
PB: predicated region body
PF: predicated region fallthrough
CT: control target
= control target key end

     0   :  { %s10439_s12 = smov 0   ;;  %s11544_s0 = inlined_call_operand.vmem [shape: f32[2,4,342], index: 0, kind: input, shape index: {}]   ;;  %s11545_s1 = inlined_call_operand.vmem [shape: f32[9,16,4], index: 1, kind: input, shape index: {}]   ;;  %s11546_s2 = inlined_call_operand.vmem [shape: f32[16,1], index: 2, kind: input, shape index: {}]   ;;  %s11547_s3 = inlined_call_operand.vmem [shape: f32[2,8,288], index: 3, kind: output, shape index: {}]  }
   0x1 LB: > { %s9586_s13 = sadd.s32 4294967295, %s10407_s12   ;;  %p9590_p0 = scmp.ge.s32.totalorder %s10407_s12, 1  ;;  %s10407_s12 = sphi %s10439_s12, %s13_s12  }
   0x2   : > { %p137_p1 = scmp.lt.s32.totalorder %s10407_s12, 3 }
   0x4   : > { %p138_p2 = pnand %p9590_p0, %p137_p1 }
   0x5   : > { %p161_p3 = scmp.lt.s32.totalorder (!%p138_p2), %s9586_s13, 1  ;;  %v10409_v0 = vmov (!%p138_p2), 0.0   ;;  %s10410_s18 = smov (!%p138_p2), 127   ;;  %v9593_v9 = vld [vmem:[%s11545_s1 + $0x10] sm:$0xff] (!%p138_p2)  ;;  %vm190_vm0 = vcmask (!%p138_p2), 31744   ;;  %v9594_v11 = vld [vmem:[%s11545_s1 + $0x18] sm:$0xff] (!%p138_p2) }
   0x6   : > { %141 = sbr.rel (%p138_p2) target bundleno = 916 (0x394), region = 32  ;;  %270 = vmatprep.mubr.f32.mxu1 (!%p138_p2), %v10409_v0  ;;  %2414 = vmatprep.mubr.f32.mxu0 (!%p138_p2), %v10409_v0  ;;  %s10411_s19 = smov (!%p138_p2), 126   ;;  %v192_v10 = vsel (!%p138_p2), %vm190_vm0, %v9593_v9, 0  ;;  %v195_v13 = vsel (!%p138_p2), %vm190_vm0, %v9594_v11, 0  ;;  %vm187_vm1 = vcmask (!%p138_p2), 1039360   ;;  %vm197_vm2 = vcmask (!%p138_p2), 1043456  }
   0x7   : > { %s10412_s20 = smov (!%p138_p2), 110   ;;  %s10413_s21 = smov (!%p138_p2), 109   ;;  %v10492_v12 = vand.u32 (!%p138_p2), 4294901760, %v192_v10  ;;  %v10498_v15 = vand.u32 (!%p138_p2), 4294901760, %v195_v13  ;;  %vm2236_vm3 = vcmask (!%p138_p2), 1031168   ;;  %v9595_v51 = vld [vmem:[%s11545_s1 + $0x20] sm:$0xff] (!%p138_p2) }
   0x8   : > { %s10414_s22 = smov (!%p138_p2), 108   ;;  %s10415_s23 = smov (!%p138_p2), 92   ;;  %v2240_v56 = vsel (!%p138_p2), %vm190_vm0, %v9595_v51, 0  ;;  %v9596_v61 = vld [vmem:[%s11545_s1 + $0x28] sm:$0xff] (!%p138_p2)  ;;  %vm3274_vm4 = vcmask (!%p138_p2), 900096   ;;  %vm4312_vm5 = vcmask (!%p138_p2), 891904  }
   0x9   : > { %v10496_v14 = vsub.f32 (!%p138_p2), %v192_v10, %v10492_v12  ;;  %v10504_v18 = vsub.f32 (!%p138_p2), %v195_v13, %v10498_v15  ;;  %s10416_s28 = smov (!%p138_p2), 91   ;;  %v10573_v60 = vand.u32 (!%p138_p2), 4294901760, %v2240_v56  ;;  %v2243_v62 = vsel (!%p138_p2), %vm190_vm0, %v9596_v61, 0  ;;  %s10417_s10 = smov (!%p138_p2), 90  }
   0xa   : > { %vm5350_vm6 = vcmask (!%p138_p2), 883712   ;;  %vm6388_vm7 = vcmask (!%p138_p2), 752640   ;;  %vm7426_vm8 = vcmask (!%p138_p2), 744448   ;;  %vm8464_vm9 = vcmask (!%p138_p2), 736256  }
   0xb   : > { %v10501_v17 = vand.u32 (!%p138_p2), 4294901760, %v10496_v14  ;;  %v10514_v25 = vand.u32 (!%p138_p2), 4294901760, %v10504_v18  ;;  %v10594_v63 = vsub.f32 (!%p138_p2), %v2240_v56, %v10573_v60  ;;  %vm9529_vm10 = vcmask (!%p138_p2), 261120  }
   0xd   : > { %s11549_s13 = smov (!%p161_p3, %s9586_s13), 1  ;;  %v274_v24 = vsub.f32 %v10496_v14, %v10501_v17  ;;  %v285_v35 = vsub.f32 %v10504_v18, %v10514_v25  ;;  %v10619_v11 = vand.u32 4294901760, %v10594_v63 }
   0xe   : > { %s10366_s14 = smul.u32 12, %s11549_s13 }
   0xf   : > { %v10528_v34 = vand.u32 4294901760, %v274_v24  ;;  %v10549_v45 = vand.u32 4294901760, %v285_v35  ;;  %s10367_s16 = smul.u32 24, %s11549_s13 }
  0x10   : > { %s10453_s17 = scalar_lea.vmem %s11544_s0, %s10366_s14 }
  0x11   : > { %v10458_v1 = vld [vmem:[%s10453_s17] sm:$0xff]  ;;  %v10467_v3 = vld [vmem:[%s10453_s17 + $0x8] sm:$0xf] }
  0x12   : > { %181 = vrot.lane.b32.xlu1 %v10458_v1, %s10410_s18  ;;  %v10463_v2 = vcombine.high %v10458_v1, %v10458_v1  ;;  %v2223_v4 = vld [vmem:[%s10453_s17 + $0x8] sm:$0xf] }
  0x13   : > { %v3261_v5 = vld [vmem:[%s10453_s17 + $0x8] sm:$0xf] }
  0x14   : > { %183 = vrot.lane.b32.xlu0 %v10463_v2, %s10410_s18  ;;  %v4299_v6 = vld [vmem:[%s10453_s17 + $0x8] sm:$0xf] }
  0x15   : > { %v5337_v7 = vld [vmem:[%s10453_s17 + $0x8] sm:$0xf] }
  0x16   : > { %2232 = vrot.lane.b32.xlu1 %v10463_v2, %s10411_s19  ;;  %v6375_v8 = vld [vmem:[%s10453_s17 + $0x8] sm:$0xf] }
  0x17   : > { %v7413_v26 = vld [vmem:[%s10453_s17 + $0x8] sm:$0xf] }
  0x18   : > { %185 = vrot.lane.b32.xlu0 %v10467_v3, %s10410_s18 }
  0x1a   : > { %2230 = vrot.lane.b32.xlu1 %v10458_v1, %s10411_s19 }
  0x1c   : > { %2234 = vrot.lane.b32.xlu0 %v2223_v4, %s10411_s19  ;;  %v10596_v4 = vand.u32 4294901760, %v2243_v62  ;;  %s170_s19 = scalar_lea.vmem %s11547_s3, %s10367_s16 }
  0x1e   : > { %3272 = vrot.lane.b32.xlu1 %v3261_v5, %s10412_s20 }
  0x20   : > { %3270 = vrot.lane.b32.xlu0 %v10463_v2, %s10412_s20 }
  0x22   : > { %4308 = vrot.lane.b32.xlu1 %v10463_v2, %s10413_s21 }
  0x24   : > { %3268 = vrot.lane.b32.xlu0 %v10458_v1, %s10412_s20 }
  0x26   : > { %4306 = vrot.lane.b32.xlu1 %v10458_v1, %s10413_s21 }
  0x28   : > { %4310 = vrot.lane.b32.xlu0 %v4299_v6, %s10413_s21 }
  0x2a   : > { %5348 = vrot.lane.b32.xlu1 %v5337_v7, %s10414_s22  ;;  %v10605_v7 = vsub.f32 %v2243_v62, %v10596_v4 }
  0x2c   : > { %5346 = vrot.lane.b32.xlu0 %v10463_v2, %s10414_s22  ;;  %v10639_v24 = vand.u32 4294901760, %v10605_v7 }
  0x2e   : > { %6384 = vrot.lane.b32.xlu1 %v10463_v2, %s10415_s23 }
  0x30   : > { %5344 = vrot.lane.b32.xlu0 %v10458_v1, %s10414_s22 }
  0x32   : > { %6382 = vrot.lane.b32.xlu1 %v10458_v1, %s10415_s23 }
  0x34   : > { %6386 = vrot.lane.b32.xlu0 %v6375_v8, %s10415_s23 }
  0x36   : > { %7424 = vrot.lane.b32.xlu1 %v7413_v26, %s10416_s28 }
  0x38   : > { %7422 = vrot.lane.b32.xlu0 %v10463_v2, %s10416_s28 }
  0x3a   : > { %8460 = vrot.lane.b32.xlu1 %v10463_v2, %s10417_s10 }
  0x3c   : > { %7420 = vrot.lane.b32.xlu0 %v10458_v1, %s10416_s28 }
  0x3e   : > { %8458 = vrot.lane.b32.xlu1 %v10458_v1, %s10417_s10 }
  0x84   : > { %v182_v16 = vpop.permute.xlu1 %181 }
  0x86   : > { %v184_v19 = vpop.permute.xlu0 %183 }
  0x87   : > { %v188_v20 = vsel %vm187_vm1, %v182_v16, %v184_v19 }
  0x88   : > { %v198_v21 = vsel %vm197_vm2, %v188_v20, 0  ;;  %v2233_v22 = vpop.permute.xlu1 %2232 }
  0x89   : > { %v10509_v23 = vand.u32 4294901760, %v198_v21 }
  0x8a   : > { %v10517_v27 = vpop.permute.xlu0 %185 }
  0x8b   : > { %v10520_v28 = vsub.f32 %v198_v21, %v10509_v23  ;;  %v189_v29 = vsel %vm187_vm1, %v184_v19, %v10517_v27  ;;  %v202_v8 = vsel %vm197_vm2, %v10517_v27, 0  ;;  %v9597_v19 = vld [vmem:[%s11545_s1 + $0x30] sm:$0xff] }
  0x8c   : > { %v200_v30 = vsel %vm197_vm2, %v189_v29, 0  ;;  %v2231_v31 = vpop.permute.xlu1 %2230  ;;  %v10614_v10 = vand.u32 4294901760, %v202_v8  ;;  %v3278_v26 = vsel %vm190_vm0, %v9597_v19, 0 }
  0x8d   : > { %v10526_v32 = vand.u32 4294901760, %v200_v30  ;;  %v2237_v33 = vsel %vm2236_vm3, %v2231_v31, %v2233_v22  ;;  %v301_v36 = vand.u32 4294901760, %v10520_v28  ;;  %v10659_v31 = vand.u32 4294901760, %v3278_v26 }
  0x8e   : > { %v10533_v37 = vpop.permute.xlu0 %2234  ;;  %v2245_v38 = vsel %vm197_vm2, %v2237_v33, 0 }
  0x8f   : > { %v294_v39 = vsub.f32 %v200_v30, %v10526_v32  ;;  %v2238_v40 = vsel %vm2236_vm3, %v2233_v22, %v10533_v37  ;;  %v10538_v41 = vand.u32 4294901760, %v2245_v38  ;;  %205 = vmatprep.subr.mxu1 %v10526_v32  ;;  %v302_v47 = vsub.f32 %v10520_v28, %v301_v36 }
  0x90   : > { %v2247_v42 = vsel %vm197_vm2, %v2238_v40, 0  ;;  %207 = vmatpush1.msra.mxu1 %v10509_v23  ;;  %v10600_v6 = vpop.permute.xlu1 %3272  ;;  %v10634_v22 = vsub.f32 %v202_v8, %v10614_v10  ;;  %v1213_v8 = vsel %vm197_vm2, %v10458_v1, 0  ;;  %v9599_v1 = vld [vmem:[%s11545_s1 + $0x40] sm:$0xff] }
  0x91   : > { %v10543_v43 = vand.u32 4294901760, %v2247_v42  ;;  %v10546_v44 = vsub.f32 %v2245_v38, %v10538_v41  ;;  %276 = vmatmul.mubr.f32.vlgmr.msra.gmra.mrb[0].mxu1 %v10528_v34  ;;  %v295_v46 = vand.u32 4294901760, %v294_v39  ;;  %v303_v55 = vand.u32 4294901760, %v302_v47  ;;  %v8451_v47 = vld [vmem:[%s10453_s17 + $0x8] sm:$0xf] }
  0x92   : > { %281 = vmatprep.mubr.f32.mxu1 %v10409_v0  ;;  %v3271_v5 = vpop.permute.xlu0 %3270  ;;  %v10657_v30 = vand.u32 4294901760, %v10634_v22  ;;  %8462 = vrot.lane.b32.xlu0 %v8451_v47, %s10417_s10 }
  0x93   : > { %v2341_v48 = vsub.f32 %v2247_v42, %v10543_v43  ;;  %v296_v49 = vsub.f32 %v294_v39, %v295_v46  ;;  %v2348_v50 = vand.u32 4294901760, %v10546_v44  ;;  %v3276_v9 = vsel %vm3274_vm4, %v3271_v5, %v10600_v6 }
  0x94   : > { %v3285_v13 = vsel %vm197_vm2, %v3276_v9, 0  ;;  %v4309_v61 = vpop.permute.xlu1 %4308 }
  0x95   : > { %287 = vmatmul.mubr.f32.gmra.mrb[2].mxu1 %v10549_v45  ;;  %v297_v52 = vand.u32 4294901760, %v296_v49  ;;  %v2342_v53 = vand.u32 4294901760, %v2341_v48  ;;  %v10564_v54 = vsub.f32 %v10546_v44, %v2348_v50  ;;  %v10630_v20 = vand.u32 4294901760, %v3285_v13 }
  0x96   : > { %367 = vmatprep.mubr.f32.mxu1 %v10409_v0  ;;  %v3269_v16 = vpop.permute.xlu0 %3268 }
  0x97   : > { %298 = vmatprep.subr.mxu1 %v297_v52  ;;  %v10568_v57 = vsub.f32 %v2341_v48, %v2342_v53  ;;  %v2350_v58 = vand.u32 4294901760, %v10564_v54  ;;  %v3275_v21 = vsel %vm3274_vm4, %v3269_v16, %v3271_v5  ;;  %v10652_v29 = vsub.f32 %v3285_v13, %v10630_v20 }
  0x98   : > { %304 = vmatpush1.msra.mxu1 %v303_v55  ;;  %v3283_v27 = vsel %vm197_vm2, %v3275_v21, 0  ;;  %v4307_v16 = vpop.permute.xlu1 %4306  ;;  %v10776_v21 = vand.u32 4294901760, %v1213_v8 }
  0x99   : > { %369 = vmatmul.mubr.f32.vlgmr.msra.gmra.mrb[0].mxu1 %v10492_v12  ;;  %384 = vmatprep.subr.mxu1 %v294_v39  ;;  %v2344_v59 = vand.u32 4294901760, %v10568_v57  ;;  %v3380_v35 = vand.u32 4294901760, %v10652_v29 }
  0x9a   : > { %387 = vmatpush1.msra.mxu1 %v10520_v28  ;;  %374 = vmatprep.mubr.f32.mxu1 %v10409_v0  ;;  %v9598_v28 = vld [vmem:[%s11545_s1 + $0x38] sm:$0xff] }
  0x9b   : > { %468 = vmatprep.subr.mxu1 %v10526_v32  ;;  %2345 = vmatprep.subr.mxu0 %v2344_v59  ;;  %v3281_v33 = vsel %vm190_vm0, %v9598_v28, 0  ;;  %v3381_v40 = vsub.f32 %v10652_v29, %v3380_v35 }
  0x9c   : > { %2351 = vmatpush1.msra.mxu0 %v2350_v58  ;;  %v10676_v38 = vand.u32 4294901760, %v3281_v33 }
  0x9d   : > { %376 = vmatmul.mubr.f32.gmra.mrb[2].mxu1 %v10498_v15  ;;  %2416 = vmatmul.mubr.f32.vlgmr.msra.gmra.mrb[0].mxu0 %v10573_v60  ;;  %v3382_v49 = vand.u32 4294901760, %v3381_v40 }
  0x9e   : > { %450 = vmatprep.mubr.f32.mxu1 %v10409_v0  ;;  %2431 = vmatprep.subr.mxu0 %v2341_v48 }
  0x9f   : > { %2434 = vmatpush1.msra.mxu0 %v10546_v44  ;;  %2497 = vmatprep.mubr.f32.mxu0 %v10409_v0 }
  0xa0   : > { %2515 = vmatprep.subr.mxu0 %v10543_v43 }
  0xa1   : > { %453 = vmatmul.mubr.f32.vlgmr.msra.gmra.mrb[0].mxu1 %v10496_v14 }
  0xa2   : > { %470 = vmatpush1.msra.mxu1 %v10509_v23  ;;  %458 = vmatprep.mubr.f32.mxu1 %v10409_v0 }
  0xa3   : > { %555 = vmatprep.subr.mxu1 %v295_v46  ;;  %v10695_v46 = vsub.f32 %v3281_v33, %v10676_v38 }
  0xa5   : > { %461 = vmatmul.mubr.f32.gmra.mrb[2].mxu1 %v10504_v18  ;;  %2500 = vmatmul.mubr.f32.vlgmr.msra.gmra.mrb[0].mxu0 %v10594_v63  ;;  %v10708_v51 = vand.u32 4294901760, %v10695_v46 }
  0xa6   : > { %533 = vmatprep.mubr.f32.mxu1 %v10409_v0  ;;  %2505 = vmatprep.mubr.f32.mxu0 %v10409_v0 }
  0xa7   : > { %2517 = vmatpush1.msra.mxu0 %v10538_v41  ;;  %v3370_v55 = vsub.f32 %v10695_v46, %v10708_v51 }
  0xa8   : > { %2602 = vmatprep.subr.mxu0 %v2342_v53 }
  0xa9   : > { %537 = vmatmul.mubr.f32.vlgmr.msra.gmra.mrb[0].mxu1 %v10501_v17  ;;  %2508 = vmatmul.mubr.f32.gmra.mrb[2].mxu0 %v10605_v7  ;;  %v10726_v56 = vand.u32 4294901760, %v3370_v55 }
  0xaa   : > { %559 = vmatpush1.msra.mxu1 %v301_v36  ;;  %542 = vmatprep.mubr.f32.mxu1 %v10409_v0  ;;  %v808_v36 = vsub.f32 %v10634_v22, %v10657_v30 }
  0xab   : > { %638 = vmatprep.subr.mxu1 %v10526_v32  ;;  %2580 = vmatprep.mubr.f32.mxu0 %v10409_v0  ;;  %v10663_v32 = vand.u32 4294901760, %v3283_v27 }
  0xac   : > { %v809_v42 = vand.u32 4294901760, %v808_v36 }
  0xad   : > { %546 = vmatmul.mubr.f32.gmra.mrb[2].mxu1 %v10514_v25  ;;  %2584 = vmatmul.mubr.f32.vlgmr.msra.gmra.mrb[0].mxu0 %v10619_v11  ;;  %v10681_v39 = vsub.f32 %v3283_v27, %v10663_v32  ;;  %v4313_v27 = vsel %vm4312_vm5, %v4307_v16, %v4309_v61 }
  0xae   : > { %622 = vmatprep.mubr.f32.mxu1 %v10409_v0  ;;  %2589 = vmatprep.mubr.f32.mxu0 %v10409_v0  ;;  %v4321_v40 = vsel %vm197_vm2, %v4313_v27, 0 }
  0xaf   : > { %2606 = vmatpush1.msra.mxu0 %v2348_v50  ;;  %v3386_v48 = vand.u32 4294901760, %v10681_v39 }
  0xb0   : > { %2685 = vmatprep.subr.mxu0 %v10543_v43 }
  0xb1   : > { %624 = vmatmul.mubr.f32.vlgmr.msra.gmra.mrb[0].mxu1 %v10492_v12  ;;  %2593 = vmatmul.mubr.f32.gmra.mrb[2].mxu0 %v10639_v24  ;;  %v3387_v52 = vsub.f32 %v10681_v39, %v3386_v48 }
  0xb2   : > { %640 = vmatpush1.msra.mxu1 %v10509_v23  ;;  %629 = vmatprep.mubr.f32.mxu1 %v10409_v0  ;;  %v10674_v23 = vsub.f32 %v3278_v26, %v10659_v31 }
  0xb3   : > { %9776 = vmatprep.subr.mxu1 %v10614_v10  ;;  %2669 = vmatprep.mubr.f32.mxu0 %v10409_v0 }
  0xb4   : > { %v10692_v44 = vand.u32 4294901760, %v10674_v23 }
  0xb5   : > { %631 = vmatmul.mubr.f32.gmra.mrb[2].mxu1 %v10498_v15  ;;  %2671 = vmatmul.mubr.f32.vlgmr.msra.gmra.mrb[0].mxu0 %v10573_v60 }
  0xb6   : > { %703 = vmatprep.mubr.f32.mxu1 %v10409_v0  ;;  %2676 = vmatprep.mubr.f32.mxu0 %v10409_v0  ;;  %v3359_v50 = vsub.f32 %v10674_v23, %v10692_v44 }
  0xb7   : > { %2687 = vmatpush1.msra.mxu0 %v10538_v41 }
  0xb8   : > { %3290 = vmatprep.subr.mxu0 %v10630_v20  ;;  %v10718_v53 = vand.u32 4294901760, %v3359_v50 }
  0xb9   : > { %705 = vmatmul.mubr.f32.vlgmr.msra.gmra.mrb[0].mxu1 %v10492_v12  ;;  %2678 = vmatmul.mubr.f32.gmra.mrb[2].mxu0 %v10596_v4 }
  0xba   : > { %9777 = vmatpush3.msra.mxu1 %v10614_v10  ;;  %710 = vmatprep.mubr.f32.mxu1 %v10409_v0 }
  0xbb   : > { %9781 = vmatprep.subr.mxu1 %v809_v42  ;;  %2750 = vmatprep.mubr.f32.mxu0 %v10409_v0 }
  0xbd   : > { %712 = vmatmul.mubr.f32.gmra.mrb[2].mxu1 %v10498_v15  ;;  %2752 = vmatmul.mubr.f32.vlgmr.msra.gmra.mrb[0].mxu0 %v10573_v60 }
  0xbe   : > { %9778 = vmatprep.mubr.f32.mxu1 %v10528_v34  ;;  %2757 = vmatprep.mubr.f32.mxu0 %v10409_v0  ;;  %v3388_v34 = vand.u32 4294901760, %v3387_v52 }
  0xbf   : > { %3292 = vmatpush1.msra.mxu0 %v10663_v32 }
  0xc0   : > { %3383 = vmatprep.subr.mxu0 %v3382_v49  ;;  %v10827_v49 = vand.u32 4294901760, %v4321_v40 }
  0xc1   : > { %9779 = vmatmul.mubr.f32.vlgmr.msra.gmra.mrb[4].mxu1 %v10549_v45  ;;  %2759 = vmatmul.mubr.f32.gmra.mrb[2].mxu0 %v10596_v4  ;;  %v10749_v45 = vpop.permute.xlu0 %4310 }
  0xc2   : > { %9782 = vmatpush3.msra.mxu1 %v809_v42  ;;  %3355 = vmatprep.mubr.f32.mxu0 %v10409_v0 }
  0xc3   : > { %9786 = vmatprep.subr.mxu1 %v10634_v22  ;;  %9783 = vmatprep.mubr.f32.mxu1 %v10492_v12 }
  0xc5   : > { %3361 = vmatmul.mubr.f32.vlgmr.msra.gmra.mrb[0].mxu0 %v10718_v53 }
  0xc6   : > { %3366 = vmatprep.mubr.f32.mxu0 %v10409_v0  ;;  %3389 = vmatpush1.msra.mxu0 %v3388_v34 }
  0xc7   : > { %3469 = vmatprep.subr.mxu0 %v10652_v29  ;;  %v4316_v29 = vsel %vm190_vm0, %v9599_v1, 0 }
  0xc8   : > { %v10819_v42 = vand.u32 4294901760, %v4316_v29 }
  0xc9   : > { %9784 = vmatmul.mubr.f32.vlgmr.msra.gmra.mrb[4].mxu1 %v10498_v15  ;;  %3372 = vmatmul.mubr.f32.gmra.mrb[2].mxu0 %v10726_v56 }
  0xca   : > { %9787 = vmatpush3.msra.mxu1 %v10634_v22  ;;  %3452 = vmatprep.mubr.f32.mxu0 %v10409_v0 }
  0xcb   : > { %9791 = vmatprep.subr.mxu1 %v10614_v10  ;;  %9788 = vmatprep.mubr.f32.mxu1 %v10496_v14  ;;  %v173_v14 = vld [vmem:[%s11545_s1] sm:$0xff] }
  0xcc   : > { %v1208_v62 = vsel %vm190_vm0, %v173_v14, 0  ;;  %v10847_v14 = vsub.f32 %v4321_v40, %v10827_v49 }
  0xcd   : > { %3454 = vmatmul.mubr.f32.vlgmr.msra.gmra.mrb[0].mxu0 %v10659_v31  ;;  %v10770_v9 = vand.u32 4294901760, %v1208_v62 }
  0xce   : > { %3459 = vmatprep.mubr.f32.mxu0 %v10409_v0  ;;  %3472 = vmatpush1.msra.mxu0 %v10681_v39 }
  0xcf   : > { %3553 = vmatprep.subr.mxu0 %v10630_v20  ;;  %v10790_v26 = vsub.f32 %v1208_v62, %v10770_v9 }
  0xd1   : > { %9789 = vmatmul.mubr.f32.vlgmr.msra.gmra.mrb[4].mxu1 %v10504_v18  ;;  %3461 = vmatmul.mubr.f32.gmra.mrb[2].mxu0 %v10676_v38  ;;  %v1215_v18 = vsel %vm197_vm2, %v10463_v2, 0  ;;  %v174_v2 = vld [vmem:[%s11545_s1 + $0x8] sm:$0xff]  ;;  %v10814_v39 = vand.u32 4294901760, %v10790_v26 }
  0xd2   : > { %9792 = vmatpush3.msra.mxu1 %v10614_v10  ;;  %3535 = vmatprep.mubr.f32.mxu0 %v10409_v0  ;;  %v10759_v5 = vand.u32 4294901760, %v1215_v18  ;;  %v1211_v19 = vsel %vm190_vm0, %v174_v2, 0 }
  0xd3   : > { %9796 = vmatprep.subr.mxu1 %v10657_v30  ;;  %9793 = vmatprep.mubr.f32.mxu1 %v10501_v17  ;;  %v4314_v17 = vsel %vm4312_vm5, %v4309_v61, %v10749_v45  ;;  %v10793_v28 = vand.u32 4294901760, %v1211_v19 }
  0xd4   : > { %v4323_v13 = vsel %vm197_vm2, %v4314_v17, 0  ;;  %v10779_v22 = vsub.f32 %v1215_v18, %v10759_v5 }
  0xd5   : > { %3538 = vmatmul.mubr.f32.vlgmr.msra.gmra.mrb[0].mxu0 %v10674_v23 }
  0xd6   : > { %3543 = vmatprep.mubr.f32.mxu0 %v10409_v0  ;;  %3555 = vmatpush1.msra.mxu0 %v10663_v32  ;;  %v1310_v33 = vand.u32 4294901760, %v10779_v22 }
  0xd7   : > { %3640 = vmatprep.subr.mxu0 %v3380_v35  ;;  %v9600_v35 = vld [vmem:[%s11545_s1 + $0x48] sm:$0xff] }
  0xd8   : > { %v4319_v47 = vsel %vm190_vm0, %v9600_v35, 0  ;;  %v1311_v50 = vsub.f32 %v10779_v22, %v1310_v33 }
  0xd9   : > { %9794 = vmatmul.mubr.f32.vlgmr.msra.gmra.mrb[4].mxu1 %v10514_v25  ;;  %3546 = vmatmul.mubr.f32.gmra.mrb[2].mxu0 %v10695_v46  ;;  %v10786_v25 = vand.u32 4294901760, %v4323_v13  ;;  %v10842_v34 = vand.u32 4294901760, %v4319_v47 }
  0xda   : > { %9797 = vmatpush3.msra.mxu1 %v10657_v30  ;;  %3618 = vmatprep.mubr.f32.mxu0 %v10409_v0  ;;  %v10800_v30 = vsub.f32 %v1213_v8, %v10776_v21  ;;  %v1312_v18 = vand.u32 4294901760, %v1311_v50 }
  0xdb   : > { %9801 = vmatprep.subr.mxu1 %v10614_v10  ;;  %9798 = vmatprep.mubr.f32.mxu1 %v10492_v12  ;;  %v10808_v36 = vsub.f32 %v4323_v13, %v10786_v25  ;;  %v10866_v8 = vsub.f32 %v4319_v47, %v10842_v34 }
  0xdd   : > { %3622 = vmatmul.mubr.f32.vlgmr.msra.gmra.mrb[0].mxu0 %v10692_v44  ;;  %v4418_v52 = vand.u32 4294901760, %v10808_v36  ;;  %v10879_v27 = vand.u32 4294901760, %v10866_v8 }
  0xde   : > { %3627 = vmatprep.mubr.f32.mxu0 %v10409_v0  ;;  %3644 = vmatpush1.msra.mxu0 %v3386_v48  ;;  %v1316_v48 = vand.u32 4294901760, %v10800_v30 }
  0xdf   : > { %3723 = vmatprep.subr.mxu0 %v10630_v20  ;;  %v10817_v20 = vsub.f32 %v1211_v19, %v10793_v28  ;;  %v4419_v62 = vsub.f32 %v10808_v36, %v4418_v52  ;;  %v4408_v40 = vsub.f32 %v10866_v8, %v10879_v27 }
  0xe0   : > { %v1317_v61 = vsub.f32 %v10800_v30, %v1316_v48 }
  0xe1   : > { %9799 = vmatmul.mubr.f32.vlgmr.msra.gmra.mrb[4].mxu1 %v10498_v15  ;;  %3631 = vmatmul.mubr.f32.gmra.mrb[2].mxu0 %v10708_v51  ;;  %v10837_v55 = vand.u32 4294901760, %v10817_v20  ;;  %v4420_v16 = vand.u32 4294901760, %v4419_v62  ;;  %v10898_v50 = vand.u32 4294901760, %v4408_v40 }
  0xe2   : > { %9802 = vmatpush3.msra.mxu1 %v10614_v10  ;;  %3707 = vmatprep.mubr.f32.mxu0 %v10409_v0  ;;  %v1289_v10 = vsub.f32 %v10790_v26, %v10814_v39  ;;  %v1318_v13 = vand.u32 4294901760, %v1317_v61 }
  0xe3   : > { %9803 = vmatprep.mubr.f32.mxu1 %v10492_v12  ;;  %1220 = vmatprep.subr.mxu1 %v10759_v5  ;;  %v10840_v12 = vsub.f32 %v4316_v29, %v10819_v42 }
  0xe4   : > { %v10858_v17 = vand.u32 4294901760, %v1289_v10  ;;  %v1217_v10 = vsel %vm197_vm2, %v10467_v3, 0 }
  0xe5   : > { %3709 = vmatmul.mubr.f32.vlgmr.msra.gmra.mrb[0].mxu0 %v10659_v31  ;;  %v10863_v2 = vand.u32 4294901760, %v10840_v12  ;;  %v10926_v61 = vand.u32 4294901760, %v1217_v10 }
  0xe6   : > { %3714 = vmatprep.mubr.f32.mxu0 %v10409_v0  ;;  %3725 = vmatpush1.msra.mxu0 %v10663_v32  ;;  %v1300_v32 = vsub.f32 %v10817_v20, %v10837_v55 }
  0xe7   : > { %4328 = vmatprep.subr.mxu0 %v10786_v25  ;;  %v4397_v1 = vsub.f32 %v10840_v12, %v10863_v2 }
  0xe8   : > { %v10874_v19 = vand.u32 4294901760, %v1300_v32 }
  0xe9   : > { %9804 = vmatmul.mubr.f32.vlgmr.msra.gmra.mrb[4].mxu1 %v10498_v15  ;;  %3716 = vmatmul.mubr.f32.gmra.mrb[2].mxu0 %v10676_v38  ;;  %v4424_v15 = vand.u32 4294901760, %v10847_v14  ;;  %v10890_v35 = vand.u32 4294901760, %v4397_v1 }
  0xea   : > { %1222 = vmatpush1.msra.mxu1 %v10776_v21  ;;  %1285 = vmatprep.mubr.f32.mxu1 %v10409_v0 }
  0xeb   : > { %3788 = vmatprep.mubr.f32.mxu0 %v10409_v0  ;;  %1313 = vmatprep.subr.mxu1 %v1312_v18  ;;  %v4425_v29 = vsub.f32 %v10847_v14, %v4424_v15  ;;  %v10924_v18 = vpop.permute.xlu1 %5348 }
  0xed   : > { %1291 = vmatmul.mubr.f32.vlgmr.msra.gmra.mrb[0].mxu1 %v10858_v17  ;;  %3790 = vmatmul.mubr.f32.vlgmr.msra.gmra.mrb[0].mxu0 %v10659_v31  ;;  %v4426_v47 = vand.u32 4294901760, %v4425_v29 }
  0xee   : > { %1296 = vmatprep.mubr.f32.mxu1 %v10409_v0  ;;  %3795 = vmatprep.mubr.f32.mxu0 %v10409_v0 }
  0xef   : > { %1319 = vmatpush1.msra.mxu1 %v1318_v13  ;;  %4330 = vmatpush1.msra.mxu0 %v10827_v49  ;;  %v9602_v13 = vld [vmem:[%s11545_s1 + $0x58] sm:$0xff] }
  0xf0   : > { %1399 = vmatprep.subr.mxu1 %v10779_v22  ;;  %4421 = vmatprep.subr.mxu0 %v4420_v16  ;;  %v5347_v22 = vpop.permute.xlu0 %5346 }
  0xf1   : > { %1302 = vmatmul.mubr.f32.gmra.mrb[2].mxu1 %v10874_v19  ;;  %3797 = vmatmul.mubr.f32.gmra.mrb[2].mxu0 %v10676_v38  ;;  %v5352_v3 = vsel %vm5350_vm6, %v5347_v22, %v10924_v18 }
  0xf2   : > { %1382 = vmatprep.mubr.f32.mxu1 %v10409_v0  ;;  %4393 = vmatprep.mubr.f32.mxu0 %v10409_v0  ;;  %v5361_v62 = vsel %vm197_vm2, %v5352_v3, 0 }
  0xf3   : > { %v10951_v32 = vand.u32 4294901760, %v5361_v62 }
  0xf5   : > { %1384 = vmatmul.mubr.f32.vlgmr.msra.gmra.mrb[0].mxu1 %v10770_v9  ;;  %4399 = vmatmul.mubr.f32.vlgmr.msra.gmra.mrb[0].mxu0 %v10890_v35  ;;  %v10971_v16 = vsub.f32 %v5361_v62, %v10951_v32 }
  0xf6   : > { %1389 = vmatprep.mubr.f32.mxu1 %v10409_v0  ;;  %4404 = vmatprep.mubr.f32.mxu0 %v10409_v0 }
  0xf7   : > { %1402 = vmatpush1.msra.mxu1 %v10800_v30  ;;  %4427 = vmatpush1.msra.mxu0 %v4426_v47  ;;  %v5345_v30 = vpop.permute.xlu0 %5344  ;;  %v5456_v40 = vand.u32 4294901760, %v10971_v16 }
  0xf8   : > { %1483 = vmatprep.subr.mxu1 %v10759_v5  ;;  %4507 = vmatprep.subr.mxu0 %v10808_v36  ;;  %v5351_v36 = vsel %vm5350_vm6, %v5345_v30, %v5347_v22 }
  0xf9   : > { %1391 = vmatmul.mubr.f32.gmra.mrb[2].mxu1 %v10793_v28  ;;  %4410 = vmatmul.mubr.f32.gmra.mrb[2].mxu0 %v10898_v50  ;;  %v5359_v1 = vsel %vm197_vm2, %v5351_v36, 0  ;;  %v5457_v3 = vsub.f32 %v10971_v16, %v5456_v40 }
  0xfa   : > { %1465 = vmatprep.mubr.f32.mxu1 %v10409_v0  ;;  %4490 = vmatprep.mubr.f32.mxu0 %v10409_v0 }
  0xfd   : > { %1468 = vmatmul.mubr.f32.vlgmr.msra.gmra.mrb[0].mxu1 %v10790_v26  ;;  %4492 = vmatmul.mubr.f32.vlgmr.msra.gmra.mrb[0].mxu0 %v10819_v42 }
  0xfe   : > { %1473 = vmatprep.mubr.f32.mxu1 %v10409_v0  ;;  %4497 = vmatprep.mubr.f32.mxu0 %v10409_v0 }
  0xff   : > { %1485 = vmatpush1.msra.mxu1 %v10776_v21  ;;  %4510 = vmatpush1.msra.mxu0 %v10847_v14  ;;  %v10983_v14 = vand.u32 4294901760, %v5359_v1 }
 0x100   : > { %1570 = vmatprep.subr.mxu1 %v1310_v33  ;;  %4591 = vmatprep.subr.mxu0 %v10786_v25  ;;  %v10938_v33 = vsub.f32 %v1217_v10, %v10926_v61 }
 0x101   : > { %1476 = vmatmul.mubr.f32.gmra.mrb[2].mxu1 %v10817_v20  ;;  %4499 = vmatmul.mubr.f32.gmra.mrb[2].mxu0 %v10842_v34  ;;  %v10998_v22 = vsub.f32 %v5359_v1, %v10983_v14 }
 0x102   : > { %1548 = vmatprep.mubr.f32.mxu1 %v10409_v0  ;;  %4573 = vmatprep.mubr.f32.mxu0 %v10409_v0 }
 0x105   : > { %1552 = vmatmul.mubr.f32.vlgmr.msra.gmra.mrb[0].mxu1 %v10814_v39  ;;  %4576 = vmatmul.mubr.f32.vlgmr.msra.gmra.mrb[0].mxu0 %v10840_v12 }
 0x106   : > { %1557 = vmatprep.mubr.f32.mxu1 %v10409_v0  ;;  %4581 = vmatprep.mubr.f32.mxu0 %v10409_v0 }
 0x107   : > { %1574 = vmatpush1.msra.mxu1 %v1316_v48  ;;  %4593 = vmatpush1.msra.mxu0 %v10827_v49  ;;  %v9601_v48 = vld [vmem:[%s11545_s1 + $0x50] sm:$0xff] }
 0x108   : > { %1653 = vmatprep.subr.mxu1 %v10759_v5  ;;  %4678 = vmatprep.subr.mxu0 %v4418_v52  ;;  %v10954_v5 = vand.u32 4294901760, %v10938_v33  ;;  %v5354_v52 = vsel %vm190_vm0, %v9601_v48, 0  ;;  %v5458_v48 = vand.u32 4294901760, %v5457_v3 }
 0x109   : > { %1561 = vmatmul.mubr.f32.gmra.mrb[2].mxu1 %v10837_v55  ;;  %4584 = vmatmul.mubr.f32.gmra.mrb[2].mxu0 %v10866_v8 }
 0x10a   : > { %1637 = vmatprep.mubr.f32.mxu1 %v10409_v0  ;;  %4656 = vmatprep.mubr.f32.mxu0 %v10409_v0  ;;  %v1823_v29 = vsub.f32 %v10938_v33, %v10954_v5 }
 0x10d   : > { %1639 = vmatmul.mubr.f32.vlgmr.msra.gmra.mrb[0].mxu1 %v10770_v9  ;;  %4660 = vmatmul.mubr.f32.vlgmr.msra.gmra.mrb[0].mxu0 %v10863_v2 }
 0x10e   : > { %1644 = vmatprep.mubr.f32.mxu1 %v10409_v0  ;;  %4665 = vmatprep.mubr.f32.mxu0 %v10409_v0 }
 0x10f   : > { %1655 = vmatpush1.msra.mxu1 %v10776_v21  ;;  %4682 = vmatpush1.msra.mxu0 %v4424_v15  ;;  %v10978_v21 = vand.u32 4294901760, %v5354_v52  ;;  %v1824_v15 = vand.u32 4294901760, %v1823_v29 }
 0x110   : > { %4761 = vmatprep.subr.mxu0 %v10786_v25  ;;  %9806 = vmatprep.subr.mxu1 %v10926_v61  ;;  %v5357_v25 = vsel %vm190_vm0, %v9602_v13, 0 }
 0x111   : > { %1646 = vmatmul.mubr.f32.gmra.mrb[2].mxu1 %v10793_v28  ;;  %4669 = vmatmul.mubr.f32.gmra.mrb[2].mxu0 %v10879_v27  ;;  %v10989_v47 = vsub.f32 %v5354_v52, %v10978_v21  ;;  %v10991_v10 = vand.u32 4294901760, %v5357_v25 }
 0x112   : > { %1718 = vmatprep.mubr.f32.mxu1 %v10409_v0  ;;  %4745 = vmatprep.mubr.f32.mxu0 %v10409_v0 }
 0x113   : > { %v11007_v62 = vand.u32 4294901760, %v10989_v47  ;;  %v11010_v30 = vsub.f32 %v5357_v25, %v10991_v10 }
 0x115   : > { %1720 = vmatmul.mubr.f32.vlgmr.msra.gmra.mrb[0].mxu1 %v10770_v9  ;;  %4747 = vmatmul.mubr.f32.vlgmr.msra.gmra.mrb[0].mxu0 %v10819_v42  ;;  %v5435_v36 = vsub.f32 %v10989_v47, %v11007_v62  ;;  %v11020_v52 = vand.u32 4294901760, %v11010_v30 }
 0x116   : > { %1725 = vmatprep.mubr.f32.mxu1 %v10409_v0  ;;  %4752 = vmatprep.mubr.f32.mxu0 %v10409_v0 }
 0x117   : > { %9807 = vmatpush3.msra.mxu1 %v10926_v61  ;;  %4763 = vmatpush1.msra.mxu0 %v10827_v49  ;;  %v5462_v49 = vand.u32 4294901760, %v10998_v22  ;;  %v5446_v13 = vsub.f32 %v11010_v30, %v11020_v52 }
 0x118   : > { %9811 = vmatprep.subr.mxu1 %v1824_v15  ;;  %5366 = vmatprep.subr.mxu0 %v10951_v32 }
 0x119   : > { %1727 = vmatmul.mubr.f32.gmra.mrb[2].mxu1 %v10793_v28  ;;  %4754 = vmatmul.mubr.f32.gmra.mrb[2].mxu0 %v10842_v34  ;;  %v11037_v29 = vand.u32 4294901760, %v5446_v13 }
 0x11a   : > { %9808 = vmatprep.mubr.f32.mxu1 %v10858_v17  ;;  %4826 = vmatprep.mubr.f32.mxu0 %v10409_v0  ;;  %v5463_v17 = vsub.f32 %v10998_v22, %v5462_v49 }
 0x11c   : > { %v5464_v1 = vand.u32 4294901760, %v5463_v17 }
 0x11d   : > { %9809 = vmatmul.mubr.f32.vlgmr.msra.gmra.mrb[4].mxu1 %v10874_v19  ;;  %4828 = vmatmul.mubr.f32.vlgmr.msra.gmra.mrb[0].mxu0 %v10819_v42  ;;  %v11030_v19 = vand.u32 4294901760, %v5435_v36 }
 0x11e   : > { %4833 = vmatprep.mubr.f32.mxu0 %v10409_v0  ;;  %9812 = vmatpush3.msra.mxu1 %v1824_v15 }
 0x11f   : > { %9813 = vmatprep.mubr.f32.mxu1 %v10770_v9  ;;  %5368 = vmatpush1.msra.mxu0 %v10983_v14 }
 0x120   : > { %9816 = vmatprep.subr.mxu1 %v10938_v33  ;;  %5459 = vmatprep.subr.mxu0 %v5458_v48 }
 0x121   : > { %4835 = vmatmul.mubr.f32.gmra.mrb[2].mxu0 %v10842_v34 }
 0x122   : > { %5431 = vmatprep.mubr.f32.mxu0 %v10409_v0 }
 0x125   : > { %9814 = vmatmul.mubr.f32.vlgmr.msra.gmra.mrb[4].mxu1 %v10793_v28  ;;  %5437 = vmatmul.mubr.f32.vlgmr.msra.gmra.mrb[0].mxu0 %v11030_v19 }
 0x126   : > { %5442 = vmatprep.mubr.f32.mxu0 %v10409_v0  ;;  %9817 = vmatpush3.msra.mxu1 %v10938_v33 }
 0x127   : > { %9818 = vmatprep.mubr.f32.mxu1 %v10790_v26  ;;  %5465 = vmatpush1.msra.mxu0 %v5464_v1  ;;  %v11056_v26 = vpop.permute.xlu0 %6386 }
 0x128   : > { %9821 = vmatprep.subr.mxu1 %v10926_v61  ;;  %5545 = vmatprep.subr.mxu0 %v10971_v16 }
 0x129   : > { %5448 = vmatmul.mubr.f32.gmra.mrb[2].mxu0 %v11037_v29 }
 0x12a   : > { %5528 = vmatprep.mubr.f32.mxu0 %v10409_v0 }
 0x12d   : > { %9819 = vmatmul.mubr.f32.vlgmr.msra.gmra.mrb[4].mxu1 %v10817_v20  ;;  %5530 = vmatmul.mubr.f32.vlgmr.msra.gmra.mrb[0].mxu0 %v10978_v21  ;;  %v6385_v20 = vpop.permute.xlu1 %6384 }
 0x12e   : > { %5535 = vmatprep.mubr.f32.mxu0 %v10409_v0  ;;  %9822 = vmatpush3.msra.mxu1 %v10926_v61 }
 0x12f   : > { %9823 = vmatprep.mubr.f32.mxu1 %v10814_v39  ;;  %5548 = vmatpush1.msra.mxu0 %v10998_v22  ;;  %v6390_v39 = vsel %vm6388_vm7, %v6385_v20, %v11056_v26 }
 0x130   : > { %9826 = vmatprep.subr.mxu1 %v10954_v5  ;;  %5629 = vmatprep.subr.mxu0 %v10951_v32 }
 0x131   : > { %5537 = vmatmul.mubr.f32.gmra.mrb[2].mxu0 %v10991_v10  ;;  %v6383_v33 = vpop.permute.xlu1 %6382 }
 0x132   : > { %5611 = vmatprep.mubr.f32.mxu0 %v10409_v0  ;;  %v6389_v16 = vsel %vm6388_vm7, %v6383_v33, %v6385_v20 }
 0x135   : > { %9824 = vmatmul.mubr.f32.vlgmr.msra.gmra.mrb[4].mxu1 %v10837_v55  ;;  %5614 = vmatmul.mubr.f32.vlgmr.msra.gmra.mrb[0].mxu0 %v10989_v47  ;;  %v6399_v55 = vsel %vm197_vm2, %v6390_v39, 0 }
 0x136   : > { %5619 = vmatprep.mubr.f32.mxu0 %v10409_v0  ;;  %9827 = vmatpush3.msra.mxu1 %v10954_v5  ;;  %v9603_v5 = vld [vmem:[%s11545_s1 + $0x60] sm:$0xff]  ;;  %v11075_v25 = vand.u32 4294901760, %v6399_v55 }
 0x137   : > { %9828 = vmatprep.mubr.f32.mxu1 %v10770_v9  ;;  %5631 = vmatpush1.msra.mxu0 %v10983_v14  ;;  %v6392_v15 = vsel %vm190_vm0, %v9603_v5, 0 }
 0x138   : > { %9831 = vmatprep.subr.mxu1 %v10926_v61  ;;  %5716 = vmatprep.subr.mxu0 %v5456_v40  ;;  %v9604_v40 = vld [vmem:[%s11545_s1 + $0x68] sm:$0xff]  ;;  %v11091_v3 = vsub.f32 %v6399_v55, %v11075_v25  ;;  %v11100_v48 = vand.u32 4294901760, %v6392_v15 }
 0x139   : > { %5622 = vmatmul.mubr.f32.gmra.mrb[2].mxu0 %v11010_v30  ;;  %v6395_v22 = vsel %vm190_vm0, %v9604_v40, 0 }
 0x13a   : > { %5694 = vmatprep.mubr.f32.mxu0 %v10409_v0  ;;  %v11114_v13 = vsub.f32 %v6392_v15, %v11100_v48  ;;  %v11116_v1 = vand.u32 4294901760, %v6395_v22 }
 0x13c   : > { %v11133_v57 = vand.u32 4294901760, %v11114_v13 }
 0x13d   : > { %9829 = vmatmul.mubr.f32.vlgmr.msra.gmra.mrb[4].mxu1 %v10793_v28  ;;  %5698 = vmatmul.mubr.f32.vlgmr.msra.gmra.mrb[0].mxu0 %v11007_v62 }
 0x13e   : > { %5703 = vmatprep.mubr.f32.mxu0 %v10409_v0  ;;  %9832 = vmatpush3.msra.mxu1 %v10926_v61  ;;  %v2249_v61 = vsel %vm197_vm2, %v10533_v37, 0  ;;  %v6494_v37 = vand.u32 4294901760, %v11091_v3  ;;  %v6473_v33 = vsub.f32 %v11114_v13, %v11133_v57 }
 0x13f   : > { %9833 = vmatprep.mubr.f32.mxu1 %v10770_v9  ;;  %2252 = vmatprep.subr.mxu1 %v10543_v43  ;;  %v2321_v9 = vsub.f32 %v10594_v63, %v10619_v11  ;;  %v6397_v43 = vsel %vm197_vm2, %v6389_v16, 0 }
 0x140   : > { %5720 = vmatpush1.msra.mxu0 %v5462_v49  ;;  %v11104_v49 = vand.u32 4294901760, %v2249_v61  ;;  %v11106_v36 = vand.u32 4294901760, %v6397_v43  ;;  %v6495_v20 = vsub.f32 %v11091_v3, %v6494_v37  ;;  %v11160_v16 = vand.u32 4294901760, %v6473_v33  ;;  %v9606_v33 = vld [vmem:[%s11545_s1 + $0x78] sm:$0xff] }
 0x141   : > { %5707 = vmatmul.mubr.f32.gmra.mrb[2].mxu0 %v11020_v52  ;;  %5799 = vmatprep.subr.mxu0 %v10951_v32  ;;  %v2322_v17 = vand.u32 4294901760, %v2321_v9  ;;  %v2332_v32 = vsub.f32 %v10605_v7, %v10639_v24 }
 0x142   : > { %5783 = vmatprep.mubr.f32.mxu0 %v10409_v0  ;;  %v2853_v39 = vsub.f32 %v2249_v61, %v11104_v49  ;;  %v6496_v55 = vand.u32 4294901760, %v6495_v20 }
 0x144   : > { %v11148_v5 = vand.u32 4294901760, %v2853_v39 }
 0x145   : > { %9834 = vmatmul.mubr.f32.vlgmr.msra.gmra.mrb[4].mxu1 %v10793_v28  ;;  %5785 = vmatmul.mubr.f32.vlgmr.msra.gmra.mrb[0].mxu0 %v10978_v21  ;;  %v11125_v28 = vsub.f32 %v6397_v43, %v11106_v36 }
 0x146   : > { %2254 = vmatpush1.msra.mxu1 %v10538_v41  ;;  %2317 = vmatprep.mubr.f32.mxu1 %v10409_v0  ;;  %v2333_v41 = vand.u32 4294901760, %v2332_v32  ;;  %v2855_v15 = vsub.f32 %v2853_v39, %v11148_v5 }
 0x147   : > { %10046 = vmatprep.subr.mxu1 %v2344_v59  ;;  %5790 = vmatprep.mubr.f32.mxu0 %v10409_v0  ;;  %v11136_v59 = vsub.f32 %v6395_v22, %v11116_v1  ;;  %v11183_v22 = vpop.permute.xlu1 %7424 }
 0x148   : > { %5801 = vmatpush1.msra.mxu0 %v10983_v14  ;;  %v6500_v14 = vand.u32 4294901760, %v11125_v28  ;;  %v2856_v9 = vand.u32 4294901760, %v2855_v15 }
 0x149   : > { %2323 = vmatmul.mubr.f32.vlgmr.msra.gmra.mrb[0].mxu1 %v2322_v17  ;;  %5792 = vmatmul.mubr.f32.gmra.mrb[2].mxu0 %v10991_v10  ;;  %v11151_v54 = vand.u32 4294901760, %v11136_v59 }
 0x14a   : > { %10047 = vmatpush1.msra.mxu1 %v2350_v58  ;;  %2328 = vmatprep.mubr.f32.mxu1 %v10409_v0  ;;  %v6501_v58 = vsub.f32 %v11125_v28, %v6500_v14 }
 0x14b   : > { %9836 = vmatprep.subr.mxu1 %v11104_v49  ;;  %5864 = vmatprep.mubr.f32.mxu0 %v10409_v0  ;;  %v6484_v40 = vsub.f32 %v11136_v59, %v11151_v54 }
 0x14c   : > { %6404 = vmatprep.subr.mxu0 %v11075_v25  ;;  %v6502_v61 = vand.u32 4294901760, %v6501_v58 }
 0x14d   : > { %2334 = vmatmul.mubr.f32.gmra.mrb[2].mxu1 %v2333_v41  ;;  %5866 = vmatmul.mubr.f32.vlgmr.msra.gmra.mrb[0].mxu0 %v10978_v21  ;;  %v11168_v43 = vand.u32 4294901760, %v6484_v40 }
 0x14e   : > { %5871 = vmatprep.mubr.f32.mxu0 %v10409_v0  ;;  %2421 = vmatprep.mubr.f32.mxu1 %v10409_v0 }
 0x14f   : > { %6406 = vmatpush1.msra.mxu0 %v11106_v36 }
 0x150   : > { %6497 = vmatprep.subr.mxu0 %v6496_v55 }
 0x151   : > { %5873 = vmatmul.mubr.f32.gmra.mrb[2].mxu0 %v10991_v10 }
 0x152   : > { %6469 = vmatprep.mubr.f32.mxu0 %v10409_v0 }
 0x155   : > { %2423 = vmatmul.mubr.f32.vlgmr.msra.gmra.mrb[2].mxu1 %v10596_v4  ;;  %6475 = vmatmul.mubr.f32.vlgmr.msra.gmra.mrb[0].mxu0 %v11160_v16 }
 0x156   : > { %9837 = vmatpush3.msra.mxu1 %v11104_v49  ;;  %9838 = vmatprep.mubr.f32.mxu1 %v2322_v17  ;;  %v7423_v17 = vpop.permute.xlu0 %7422 }
 0x157   : > { %9841 = vmatprep.subr.mxu1 %v2856_v9  ;;  %6480 = vmatprep.mubr.f32.mxu0 %v10409_v0  ;;  %v7428_v32 = vsel %vm7426_vm8, %v7423_v17, %v11183_v22 }
 0x158   : > { %6503 = vmatpush1.msra.mxu0 %v6502_v61  ;;  %v7437_v20 = vsel %vm197_vm2, %v7428_v32, 0 }
 0x159   : > { %9839 = vmatmul.mubr.f32.vlgmr.msra.gmra.mrb[4].mxu1 %v2333_v41  ;;  %6486 = vmatmul.mubr.f32.gmra.mrb[2].mxu0 %v11168_v43 }
 0x15a   : > { %9842 = vmatpush3.msra.mxu1 %v2856_v9  ;;  %6566 = vmatprep.mubr.f32.mxu0 %v10409_v0 }
 0x15b   : > { %9846 = vmatprep.subr.mxu1 %v2853_v39  ;;  %9843 = vmatprep.mubr.f32.mxu1 %v10573_v60 }
 0x15c   : > { %6583 = vmatprep.subr.mxu0 %v11091_v3  ;;  %v9605_v3 = vld [vmem:[%s11545_s1 + $0x70] sm:$0xff] }
 0x15d   : > { %6568 = vmatmul.mubr.f32.vlgmr.msra.gmra.mrb[0].mxu0 %v11100_v48 }
 0x15e   : > { %6573 = vmatprep.mubr.f32.mxu0 %v10409_v0  ;;  %6586 = vmatpush1.msra.mxu0 %v11125_v28 }
 0x15f   : > { %6667 = vmatprep.subr.mxu0 %v11075_v25 }
 0x161   : > { %9844 = vmatmul.mubr.f32.vlgmr.msra.gmra.mrb[4].mxu1 %v10596_v4  ;;  %6575 = vmatmul.mubr.f32.gmra.mrb[2].mxu0 %v11116_v1 }
 0x162   : > { %9847 = vmatpush3.msra.mxu1 %v2853_v39  ;;  %6649 = vmatprep.mubr.f32.mxu0 %v10409_v0  ;;  %v11201_v39 = vand.u32 4294901760, %v7437_v20 }
 0x163   : > { %9851 = vmatprep.subr.mxu1 %v11104_v49  ;;  %9848 = vmatprep.mubr.f32.mxu1 %v10594_v63  ;;  %v7421_v63 = vpop.permute.xlu0 %7420 }
 0x164   : > { %v11218_v55 = vsub.f32 %v7437_v20, %v11201_v39 }
 0x165   : > { %6652 = vmatmul.mubr.f32.vlgmr.msra.gmra.mrb[0].mxu0 %v11114_v13 }
 0x166   : > { %6657 = vmatprep.mubr.f32.mxu0 %v10409_v0  ;;  %6669 = vmatpush1.msra.mxu0 %v11106_v36 }
 0x167   : > { %6754 = vmatprep.subr.mxu0 %v6494_v37  ;;  %v7427_v37 = vsel %vm7426_vm8, %v7421_v63, %v7423_v17 }
 0x169   : > { %9849 = vmatmul.mubr.f32.vlgmr.msra.gmra.mrb[4].mxu1 %v10605_v7  ;;  %6660 = vmatmul.mubr.f32.gmra.mrb[2].mxu0 %v11136_v59  ;;  %v3287_v7 = vsel %vm197_vm2, %v10600_v6, 0  ;;  %v7435_v6 = vsel %vm197_vm2, %v7427_v37, 0 }
 0x16a   : > { %9852 = vmatpush3.msra.mxu1 %v11104_v49  ;;  %6732 = vmatprep.mubr.f32.mxu0 %v10409_v0  ;;  %v11214_v41 = vand.u32 4294901760, %v3287_v7 }
 0x16b   : > { %9856 = vmatprep.subr.mxu1 %v11148_v5  ;;  %9853 = vmatprep.mubr.f32.mxu1 %v10619_v11  ;;  %v7430_v11 = vsel %vm190_vm0, %v9605_v3, 0 }
 0x16c   : > { %v11226_v28 = vand.u32 4294901760, %v7430_v11  ;;  %v3891_v58 = vsub.f32 %v3287_v7, %v11214_v41 }
 0x16d   : > { %6736 = vmatmul.mubr.f32.vlgmr.msra.gmra.mrb[0].mxu0 %v11133_v57 }
 0x16e   : > { %6741 = vmatprep.mubr.f32.mxu0 %v10409_v0  ;;  %6758 = vmatpush1.msra.mxu0 %v6500_v14  ;;  %v7433_v14 = vsel %vm190_vm0, %v9606_v33, 0  ;;  %v11239_v15 = vsub.f32 %v7430_v11, %v11226_v28  ;;  %v11248_v61 = vand.u32 4294901760, %v3891_v58 }
 0x16f   : > { %6837 = vmatprep.subr.mxu0 %v11075_v25  ;;  %v11230_v25 = vand.u32 4294901760, %v7435_v6 }
 0x170   : > { %v11257_v17 = vand.u32 4294901760, %v11239_v15  ;;  %v3893_v20 = vsub.f32 %v3891_v58, %v11248_v61 }
 0x171   : > { %9854 = vmatmul.mubr.f32.vlgmr.msra.gmra.mrb[4].mxu1 %v10639_v24  ;;  %6745 = vmatmul.mubr.f32.gmra.mrb[2].mxu0 %v11151_v54  ;;  %v7532_v24 = vand.u32 4294901760, %v11218_v55  ;;  %v11246_v40 = vsub.f32 %v7435_v6, %v11230_v25 }
 0x172   : > { %9857 = vmatpush3.msra.mxu1 %v11148_v5  ;;  %6821 = vmatprep.mubr.f32.mxu0 %v10409_v0  ;;  %v11241_v5 = vand.u32 4294901760, %v7433_v14  ;;  %v7511_v3 = vsub.f32 %v11239_v15, %v11257_v17 }
 0x173   : > { %9861 = vmatprep.subr.mxu1 %v11104_v49  ;;  %9858 = vmatprep.mubr.f32.mxu1 %v10573_v60  ;;  %v7533_v9 = vsub.f32 %v11218_v55, %v7532_v24  ;;  %v7538_v32 = vand.u32 4294901760, %v11246_v40 }
 0x174   : > { %v11281_v37 = vand.u32 4294901760, %v7511_v3 }
 0x175   : > { %6823 = vmatmul.mubr.f32.vlgmr.msra.gmra.mrb[0].mxu0 %v11100_v48  ;;  %v7534_v63 = vand.u32 4294901760, %v7533_v9 }
 0x176   : > { %6828 = vmatprep.mubr.f32.mxu0 %v10409_v0  ;;  %6839 = vmatpush1.msra.mxu0 %v11106_v36  ;;  %v11260_v36 = vsub.f32 %v7433_v14, %v11241_v5 }
 0x177   : > { %7442 = vmatprep.subr.mxu0 %v11201_v39 }
 0x178   : > { %v11272_v7 = vand.u32 4294901760, %v11260_v36 }
 0x179   : > { %9859 = vmatmul.mubr.f32.vlgmr.msra.gmra.mrb[4].mxu1 %v10596_v4  ;;  %6830 = vmatmul.mubr.f32.gmra.mrb[2].mxu0 %v11116_v1 }
 0x17a   : > { %9862 = vmatpush3.msra.mxu1 %v11104_v49  ;;  %6902 = vmatprep.mubr.f32.mxu0 %v10409_v0  ;;  %v7539_v49 = vsub.f32 %v11246_v40, %v7538_v32  ;;  %v7522_v11 = vsub.f32 %v11260_v36, %v11272_v7 }
 0x17b   : > { %9866 = vmatprep.subr.mxu1 %v11214_v41  ;;  %9863 = vmatprep.mubr.f32.mxu1 %v10573_v60  ;;  %v3894_v60 = vand.u32 4294901760, %v3893_v20 }
 0x17c   : > { %v7540_v6 = vand.u32 4294901760, %v7539_v49  ;;  %v11289_v33 = vand.u32 4294901760, %v7522_v11 }
 0x17d   : > { %6904 = vmatmul.mubr.f32.vlgmr.msra.gmra.mrb[0].mxu0 %v11100_v48 }
 0x17e   : > { %6909 = vmatprep.mubr.f32.mxu0 %v10409_v0  ;;  %7444 = vmatpush1.msra.mxu0 %v11230_v25 }
 0x17f   : > { %7535 = vmatprep.subr.mxu0 %v7534_v63  ;;  %v9608_v63 = vld [vmem:[%s11545_s1 + $0x88] sm:$0xff] }
 0x181   : > { %9864 = vmatmul.mubr.f32.vlgmr.msra.gmra.mrb[4].mxu1 %v10596_v4  ;;  %6911 = vmatmul.mubr.f32.gmra.mrb[2].mxu0 %v11116_v1  ;;  %v11304_v4 = vpop.permute.xlu0 %8462 }
 0x182   : > { %9867 = vmatpush3.msra.mxu1 %v11214_v41  ;;  %7507 = vmatprep.mubr.f32.mxu0 %v10409_v0 }
 0x183   : > { %9871 = vmatprep.subr.mxu1 %v3894_v60  ;;  %9868 = vmatprep.mubr.f32.mxu1 %v10718_v53  ;;  %v8461_v53 = vpop.permute.xlu1 %8460 }
 0x185   : > { %7513 = vmatmul.mubr.f32.vlgmr.msra.gmra.mrb[0].mxu0 %v11281_v37 }
 0x186   : > { %7518 = vmatprep.mubr.f32.mxu0 %v10409_v0  ;;  %7541 = vmatpush1.msra.mxu0 %v7540_v6 }
 0x187   : > { %7621 = vmatprep.subr.mxu0 %v11218_v55  ;;  %v9607_v55 = vld [vmem:[%s11545_s1 + $0x80] sm:$0xff] }
 0x189   : > { %9869 = vmatmul.mubr.f32.vlgmr.msra.gmra.mrb[4].mxu1 %v10726_v56  ;;  %7524 = vmatmul.mubr.f32.gmra.mrb[2].mxu0 %v11289_v33  ;;  %v8466_v56 = vsel %vm8464_vm9, %v8461_v53, %v11304_v4 }
 0x18a   : > { %9872 = vmatpush3.msra.mxu1 %v3894_v60  ;;  %7604 = vmatprep.mubr.f32.mxu0 %v10409_v0  ;;  %v8475_v14 = vsel %vm197_vm2, %v8466_v56, 0 }
 0x18b   : > { %9876 = vmatprep.subr.mxu1 %v3891_v58  ;;  %9873 = vmatprep.mubr.f32.mxu1 %v10659_v31 }
 0x18d   : > { %7606 = vmatmul.mubr.f32.vlgmr.msra.gmra.mrb[0].mxu0 %v11226_v28 }
 0x18e   : > { %7611 = vmatprep.mubr.f32.mxu0 %v10409_v0  ;;  %7624 = vmatpush1.msra.mxu0 %v11246_v40 }
 0x18f   : > { %7705 = vmatprep.subr.mxu0 %v11201_v39 }
 0x191   : > { %9874 = vmatmul.mubr.f32.vlgmr.msra.gmra.mrb[4].mxu1 %v10676_v38  ;;  %7613 = vmatmul.mubr.f32.gmra.mrb[2].mxu0 %v11241_v5 }
 0x192   : > { %9877 = vmatpush3.msra.mxu1 %v3891_v58  ;;  %7687 = vmatprep.mubr.f32.mxu0 %v10409_v0  ;;  %v11322_v58 = vand.u32 4294901760, %v8475_v14 }
 0x193   : > { %9881 = vmatprep.subr.mxu1 %v11214_v41  ;;  %9878 = vmatprep.mubr.f32.mxu1 %v10674_v23  ;;  %v8459_v23 = vpop.permute.xlu1 %8458 }
 0x194   : > { %v11339_v20 = vsub.f32 %v8475_v14, %v11322_v58 }
 0x195   : > { %7690 = vmatmul.mubr.f32.vlgmr.msra.gmra.mrb[0].mxu0 %v11239_v15 }
 0x196   : > { %7695 = vmatprep.mubr.f32.mxu0 %v10409_v0  ;;  %7707 = vmatpush1.msra.mxu0 %v11230_v25 }
 0x197   : > { %7792 = vmatprep.subr.mxu0 %v7532_v24  ;;  %v8465_v24 = vsel %vm8464_vm9, %v8459_v23, %v8461_v53 }
 0x199   : > { %9879 = vmatmul.mubr.f32.vlgmr.msra.gmra.mrb[4].mxu1 %v10695_v46  ;;  %7698 = vmatmul.mubr.f32.gmra.mrb[2].mxu0 %v11260_v36  ;;  %v4325_v46 = vsel %vm197_vm2, %v10749_v45, 0  ;;  %v8473_v45 = vsel %vm197_vm2, %v8465_v24, 0 }
 0x19a   : > { %9882 = vmatpush3.msra.mxu1 %v11214_v41  ;;  %7770 = vmatprep.mubr.f32.mxu0 %v10409_v0  ;;  %v11335_v9 = vand.u32 4294901760, %v4325_v46 }
 0x19b   : > { %9886 = vmatprep.subr.mxu1 %v11248_v61  ;;  %9883 = vmatprep.mubr.f32.mxu1 %v10692_v44  ;;  %v8468_v44 = vsel %vm190_vm0, %v9607_v55, 0 }
 0x19c   : > { %v11347_v40 = vand.u32 4294901760, %v8468_v44  ;;  %v11355_v3 = vsub.f32 %v4325_v46, %v11335_v9 }
 0x19d   : > { %7774 = vmatmul.mubr.f32.vlgmr.msra.gmra.mrb[0].mxu0 %v11257_v17 }
 0x19e   : > { %7779 = vmatprep.mubr.f32.mxu0 %v10409_v0  ;;  %7796 = vmatpush1.msra.mxu0 %v7538_v32  ;;  %v8471_v32 = vsel %vm190_vm0, %v9608_v63, 0  ;;  %v11362_v49 = vsub.f32 %v8468_v44, %v11347_v40  ;;  %v11372_v11 = vand.u32 4294901760, %v11355_v3  ;;  %v9488_v63 = vld [vmem:[%s11546_s2] sm:$0xff] }
 0x19f   : > { %7875 = vmatprep.subr.mxu0 %v11201_v39  ;;  %v11351_v39 = vand.u32 4294901760, %v8473_v45 }
 0x1a0   : > { %v11381_v53 = vand.u32 4294901760, %v11362_v49  ;;  %v4931_v14 = vsub.f32 %v11355_v3, %v11372_v11 }
 0x1a1   : > { %9884 = vmatmul.mubr.f32.vlgmr.msra.gmra.mrb[4].mxu1 %v10708_v51  ;;  %7783 = vmatmul.mubr.f32.gmra.mrb[2].mxu0 %v11272_v7  ;;  %v8570_v51 = vand.u32 4294901760, %v11339_v20  ;;  %v11369_v60 = vsub.f32 %v8473_v45, %v11351_v39 }
 0x1a2   : > { %9887 = vmatpush3.msra.mxu1 %v11248_v61  ;;  %7859 = vmatprep.mubr.f32.mxu0 %v10409_v0  ;;  %v11364_v61 = vand.u32 4294901760, %v8471_v32  ;;  %v8549_v55 = vsub.f32 %v11362_v49, %v11381_v53  ;;  %v4932_v24 = vand.u32 4294901760, %v4931_v14 }
 0x1a3   : > { %9891 = vmatprep.subr.mxu1 %v11214_v41  ;;  %9888 = vmatprep.mubr.f32.mxu1 %v10659_v31  ;;  %v8571_v6 = vsub.f32 %v11339_v20, %v8570_v51  ;;  %v8576_v56 = vand.u32 4294901760, %v11369_v60 }
 0x1a5   : > { %7861 = vmatmul.mubr.f32.vlgmr.msra.gmra.mrb[0].mxu0 %v11226_v28  ;;  %v8572_v23 = vand.u32 4294901760, %v8571_v6 }
 0x1a6   : > { %7866 = vmatprep.mubr.f32.mxu0 %v10409_v0  ;;  %7877 = vmatpush1.msra.mxu0 %v11230_v25  ;;  %v11384_v25 = vsub.f32 %v8471_v32, %v11364_v61  ;;  %v9489_v32 = vld [vmem:[%s11546_s2 + $0x8] sm:$0xff] }
 0x1a7   : > { %8480 = vmatprep.subr.mxu0 %v11322_v58 }
 0x1a8   : > { %v11397_v46 = vand.u32 4294901760, %v11384_v25 }
 0x1a9   : > { %9889 = vmatmul.mubr.f32.vlgmr.msra.gmra.mrb[4].mxu1 %v10676_v38  ;;  %7868 = vmatmul.mubr.f32.gmra.mrb[2].mxu0 %v11241_v5 }
 0x1aa   : > { %9892 = vmatpush3.msra.mxu1 %v11214_v41  ;;  %7940 = vmatprep.mubr.f32.mxu0 %v10409_v0  ;;  %v8577_v41 = vsub.f32 %v11369_v60, %v8576_v56  ;;  %v8560_v44 = vsub.f32 %v11384_v25, %v11397_v46 }
 0x1ab   : > { %9896 = vmatprep.subr.mxu1 %v11335_v9  ;;  %9893 = vmatprep.mubr.f32.mxu1 %v10659_v31  ;;  %v11404_v31 = vand.u32 4294901760, %v8549_v55 }
 0x1ac   : > { %v8578_v45 = vand.u32 4294901760, %v8577_v41  ;;  %v11418_v6 = vand.u32 4294901760, %v8560_v44 }
 0x1ad   : > { %7942 = vmatmul.mubr.f32.vlgmr.msra.gmra.mrb[0].mxu0 %v11226_v28 }
 0x1ae   : > { %7947 = vmatprep.mubr.f32.mxu0 %v10409_v0  ;;  %8482 = vmatpush1.msra.mxu0 %v11351_v39 }
 0x1af   : > { %8573 = vmatprep.subr.mxu0 %v8572_v23 }
 0x1b1   : > { %9894 = vmatmul.mubr.f32.vlgmr.msra.gmra.mrb[4].mxu1 %v10676_v38  ;;  %7949 = vmatmul.mubr.f32.gmra.mrb[2].mxu0 %v11241_v5  ;;  %v10418_v38 = vmov 0  }
 0x1b2   : > { %9897 = vmatpush3.msra.mxu1 %v11335_v9  ;;  %8545 = vmatprep.mubr.f32.mxu0 %v10409_v0 }
 0x1b3   : > { %9901 = vmatprep.subr.mxu1 %v4932_v24  ;;  %9898 = vmatprep.mubr.f32.mxu1 %v10890_v35 }
 0x1b4   : > { %10387 = vset.pattern.permute.xlu1 %v10418_v38  ;;  %10386 = vset.pattern.permute.xlu0 %v10418_v38 }
 0x1b5   : > { %8551 = vmatmul.mubr.f32.vlgmr.msra.gmra.mrb[0].mxu0 %v11404_v31  ;;  %9492 = vperm.xlu1 %10387, %v9488_v63  }
 0x1b6   : > { %8556 = vmatprep.mubr.f32.mxu0 %v10409_v0  ;;  %8579 = vmatpush1.msra.mxu0 %v8578_v45 }
 0x1b7   : > { %8659 = vmatprep.subr.mxu0 %v11339_v20  ;;  %9497 = vperm.xlu0 %10386, %v9489_v32  }
 0x1b9   : > { %9899 = vmatmul.mubr.f32.vlgmr.msra.gmra.mrb[4].mxu1 %v10898_v50  ;;  %8562 = vmatmul.mubr.f32.gmra.mrb[2].mxu0 %v11418_v6 }
 0x1ba   : > { %9902 = vmatpush3.msra.mxu1 %v4932_v24  ;;  %8642 = vmatprep.mubr.f32.mxu0 %v10409_v0 }
 0x1bb   : > { %9906 = vmatprep.subr.mxu1 %v11355_v3  ;;  %9903 = vmatprep.mubr.f32.mxu1 %v10819_v42 }
 0x1bd   : > { %8644 = vmatmul.mubr.f32.vlgmr.msra.gmra.mrb[0].mxu0 %v11347_v40 }
 0x1be   : > { %8649 = vmatprep.mubr.f32.mxu0 %v10409_v0  ;;  %8662 = vmatpush1.msra.mxu0 %v11369_v60 }
 0x1bf   : > { %8743 = vmatprep.subr.mxu0 %v11322_v58 }
 0x1c1   : > { %9904 = vmatmul.mubr.f32.vlgmr.msra.gmra.mrb[4].mxu1 %v10842_v34  ;;  %8651 = vmatmul.mubr.f32.gmra.mrb[2].mxu0 %v11364_v61 }
 0x1c2   : > { %9907 = vmatpush3.msra.mxu1 %v11355_v3  ;;  %8725 = vmatprep.mubr.f32.mxu0 %v10409_v0 }
 0x1c3   : > { %9911 = vmatprep.subr.mxu1 %v11335_v9  ;;  %9908 = vmatprep.mubr.f32.mxu1 %v10840_v12  ;;  %v5363_v12 = vsel %vm197_vm2, %v10924_v18, 0 }
 0x1c4   : > { %v5880_v35 = vand.u32 4294901760, %v5363_v12 }
 0x1c5   : > { %8728 = vmatmul.mubr.f32.vlgmr.msra.gmra.mrb[0].mxu0 %v11362_v49 }
 0x1c6   : > { %8733 = vmatprep.mubr.f32.mxu0 %v10409_v0  ;;  %8745 = vmatpush1.msra.mxu0 %v11351_v39 }
 0x1c7   : > { %8830 = vmatprep.subr.mxu0 %v8570_v51 }
 0x1c9   : > { %9909 = vmatmul.mubr.f32.vlgmr.msra.gmra.mrb[4].mxu1 %v10866_v8  ;;  %8736 = vmatmul.mubr.f32.gmra.mrb[2].mxu0 %v11384_v25 }
 0x1ca   : > { %9912 = vmatpush3.msra.mxu1 %v11335_v9  ;;  %8808 = vmatprep.mubr.f32.mxu0 %v10409_v0 }
 0x1cb   : > { %9916 = vmatprep.subr.mxu1 %v11372_v11  ;;  %9913 = vmatprep.mubr.f32.mxu1 %v10863_v2  ;;  %v5967_v2 = vsub.f32 %v5363_v12, %v5880_v35 }
 0x1cd   : > { %8812 = vmatmul.mubr.f32.vlgmr.msra.gmra.mrb[0].mxu0 %v11381_v53  ;;  %v5968_v8 = vand.u32 4294901760, %v5967_v2 }
 0x1ce   : > { %8817 = vmatprep.mubr.f32.mxu0 %v10409_v0  ;;  %8834 = vmatpush1.msra.mxu0 %v8576_v56 }
 0x1cf   : > { %8913 = vmatprep.subr.mxu0 %v11322_v58 }
 0x1d1   : > { %9914 = vmatmul.mubr.f32.vlgmr.msra.gmra.mrb[4].mxu1 %v10879_v27  ;;  %8821 = vmatmul.mubr.f32.gmra.mrb[2].mxu0 %v11397_v46  ;;  %v5969_v27 = vsub.f32 %v5967_v2, %v5968_v8 }
 0x1d2   : > { %9917 = vmatpush3.msra.mxu1 %v11372_v11  ;;  %8897 = vmatprep.mubr.f32.mxu0 %v10409_v0 }
 0x1d3   : > { %9921 = vmatprep.subr.mxu1 %v11335_v9  ;;  %9918 = vmatprep.mubr.f32.mxu1 %v10819_v42  ;;  %v5970_v50 = vand.u32 4294901760, %v5969_v27 }
 0x1d5   : > { %8899 = vmatmul.mubr.f32.vlgmr.msra.gmra.mrb[0].mxu0 %v11347_v40 }
 0x1d6   : > { %8904 = vmatprep.mubr.f32.mxu0 %v10409_v0  ;;  %8915 = vmatpush1.msra.mxu0 %v11351_v39 }
 0x1d9   : > { %9919 = vmatmul.mubr.f32.vlgmr.msra.gmra.mrb[4].mxu1 %v10842_v34  ;;  %8906 = vmatmul.mubr.f32.gmra.mrb[2].mxu0 %v11364_v61 }
 0x1da   : > { %9922 = vmatpush3.msra.mxu1 %v11335_v9  ;;  %8978 = vmatprep.mubr.f32.mxu0 %v10409_v0 }
 0x1db   : > { %9926 = vmatprep.subr.mxu1 %v5880_v35  ;;  %9923 = vmatprep.mubr.f32.mxu1 %v10819_v42 }
 0x1dd   : > { %8980 = vmatmul.mubr.f32.vlgmr.msra.gmra.mrb[0].mxu0 %v11347_v40 }
 0x1de   : > { %8985 = vmatprep.mubr.f32.mxu0 %v10409_v0  ;;  %v6401_v0 = vsel %vm197_vm2, %v11056_v26, 0 }
 0x1df   : > { %v6918_v42 = vand.u32 4294901760, %v6401_v0 }
 0x1e1   : > { %9924 = vmatmul.mubr.f32.vlgmr.msra.gmra.mrb[4].mxu1 %v10842_v34  ;;  %8987 = vmatmul.mubr.f32.gmra.mrb[2].mxu0 %v11364_v61  ;;  %v7005_v34 = vsub.f32 %v6401_v0, %v6918_v42 }
 0x1e2   : > { %9927 = vmatpush3.msra.mxu1 %v5880_v35  ;;  %9928 = vmatprep.mubr.f32.mxu1 %v11030_v19  ;;  %v7439_v19 = vsel %vm197_vm2, %v11183_v22, 0 }
 0x1e3   : > { %9931 = vmatprep.subr.mxu1 %v5970_v50  ;;  %v7006_v18 = vand.u32 4294901760, %v7005_v34 }
 0x1e9   : > { %9929 = vmatmul.mubr.f32.vlgmr.msra.gmra.mrb[4].mxu1 %v11037_v29  ;;  %v7956_v29 = vand.u32 4294901760, %v7439_v19 }
 0x1ea   : > { %9932 = vmatpush3.msra.mxu1 %v5970_v50  ;;  %9933 = vmatprep.mubr.f32.mxu1 %v10978_v21 }
 0x1eb   : > { %9936 = vmatprep.subr.mxu1 %v5967_v2  ;;  %v8043_v26 = vsub.f32 %v7439_v19, %v7956_v29 }
 0x1f1   : > { %9934 = vmatmul.mubr.f32.vlgmr.msra.gmra.mrb[4].mxu1 %v10991_v10 }
 0x1f2   : > { %9937 = vmatpush3.msra.mxu1 %v5967_v2  ;;  %9938 = vmatprep.mubr.f32.mxu1 %v10989_v47  ;;  %v7007_v47 = vsub.f32 %v7005_v34, %v7006_v18 }
 0x1f3   : > { %9941 = vmatprep.subr.mxu1 %v5880_v35 }
 0x1f9   : > { %9939 = vmatmul.mubr.f32.vlgmr.msra.gmra.mrb[4].mxu1 %v11010_v30 }
 0x1fa   : > { %9942 = vmatpush3.msra.mxu1 %v5880_v35  ;;  %9943 = vmatprep.mubr.f32.mxu1 %v11007_v62  ;;  %v7008_v62 = vand.u32 4294901760, %v7007_v47 }
 0x1fb   : > { %9946 = vmatprep.subr.mxu1 %v5968_v8 }
 0x201   : > { %9944 = vmatmul.mubr.f32.vlgmr.msra.gmra.mrb[4].mxu1 %v11020_v52 }
 0x202   : > { %9947 = vmatpush3.msra.mxu1 %v5968_v8  ;;  %9948 = vmatprep.mubr.f32.mxu1 %v10978_v21 }
 0x203   : > { %9951 = vmatprep.subr.mxu1 %v5880_v35 }
 0x209   : > { %9949 = vmatmul.mubr.f32.vlgmr.msra.gmra.mrb[4].mxu1 %v10991_v10 }
 0x20a   : > { %9952 = vmatpush3.msra.mxu1 %v5880_v35  ;;  %9953 = vmatprep.mubr.f32.mxu1 %v10978_v21 }
 0x20b   : > { %9956 = vmatprep.subr.mxu1 %v6918_v42 }
 0x211   : > { %9954 = vmatmul.mubr.f32.vlgmr.msra.gmra.mrb[4].mxu1 %v10991_v10 }
 0x212   : > { %9957 = vmatpush3.msra.mxu1 %v6918_v42  ;;  %9958 = vmatprep.mubr.f32.mxu1 %v11160_v16 }
 0x213   : > { %9961 = vmatprep.subr.mxu1 %v7008_v62 }
 0x219   : > { %9959 = vmatmul.mubr.f32.vlgmr.msra.gmra.mrb[4].mxu1 %v11168_v43 }
 0x21a   : > { %9962 = vmatpush3.msra.mxu1 %v7008_v62  ;;  %9963 = vmatprep.mubr.f32.mxu1 %v11100_v48 }
 0x21b   : > { %9966 = vmatprep.subr.mxu1 %v7005_v34 }
 0x21c   : > { %v11488_v30 = vpop.f32.mrb[0].mxu1 }
 0x21d   : > { %v11490_v52 = vpop.f32.mrb[1].mxu1 }
 0x221   : > { %9964 = vmatmul.mubr.f32.vlgmr.msra.gmra.mrb[4].mxu1 %v11116_v1 }
 0x222   : > { %9967 = vmatpush3.msra.mxu1 %v7005_v34  ;;  %9968 = vmatprep.mubr.f32.mxu1 %v11114_v13  ;;  %v8044_v13 = vand.u32 4294901760, %v8043_v26 }
 0x223   : > { %9971 = vmatprep.subr.mxu1 %v6918_v42 }
 0x228   : > { %v11494_v21 = vpop.f32.mrb[2].mxu1 }
 0x229   : > { %v11496_v10 = vpop.f32.mrb[3].mxu1  ;;  %9969 = vmatmul.mubr.f32.vlgmr.msra.gmra.mrb[4].mxu1 %v11136_v59 }
 0x22a   : > { %9972 = vmatpush3.msra.mxu1 %v6918_v42  ;;  %9973 = vmatprep.mubr.f32.mxu1 %v11133_v57  ;;  %v8045_v57 = vsub.f32 %v8043_v26, %v8044_v13 }
 0x22b   : > { %9976 = vmatprep.subr.mxu1 %v7006_v18 }
 0x22c   : > { %v8046_v59 = vand.u32 4294901760, %v8045_v57 }
 0x231   : > { %9974 = vmatmul.mubr.f32.vlgmr.msra.gmra.mrb[4].mxu1 %v11151_v54 }
 0x232   : > { %9977 = vmatpush3.msra.mxu1 %v7006_v18  ;;  %9978 = vmatprep.mubr.f32.mxu1 %v11100_v48 }
 0x233   : > { %9981 = vmatprep.subr.mxu1 %v6918_v42 }
 0x239   : > { %9979 = vmatmul.mubr.f32.vlgmr.msra.gmra.mrb[4].mxu1 %v11116_v1 }
 0x23a   : > { %9982 = vmatpush3.msra.mxu1 %v6918_v42  ;;  %9983 = vmatprep.mubr.f32.mxu1 %v11100_v48  ;;  %v8477_v48 = vsel %vm197_vm2, %v11304_v4, 0 }
 0x23b   : > { %9986 = vmatprep.subr.mxu1 %v7956_v29 }
 0x241   : > { %9984 = vmatmul.mubr.f32.vlgmr.msra.gmra.mrb[4].mxu1 %v11116_v1  ;;  %v8994_v1 = vand.u32 4294901760, %v8477_v48 }
 0x242   : > { %9987 = vmatpush3.msra.mxu1 %v7956_v29  ;;  %9988 = vmatprep.mubr.f32.mxu1 %v11281_v37 }
 0x243   : > { %9991 = vmatprep.subr.mxu1 %v8046_v59  ;;  %v9081_v54 = vsub.f32 %v8477_v48, %v8994_v1 }
 0x245   : > { %v9082_v16 = vand.u32 4294901760, %v9081_v54 }
 0x247   : > { %v9083_v43 = vsub.f32 %v9081_v54, %v9082_v16 }
 0x249   : > { %9989 = vmatmul.mubr.f32.vlgmr.msra.gmra.mrb[4].mxu1 %v11289_v33  ;;  %v9084_v22 = vand.u32 4294901760, %v9083_v43 }
 0x24a   : > { %9992 = vmatpush3.msra.mxu1 %v8046_v59  ;;  %9993 = vmatprep.mubr.f32.mxu1 %v11226_v28 }
 0x24b   : > { %9996 = vmatprep.subr.mxu1 %v8043_v26 }
 0x251   : > { %9994 = vmatmul.mubr.f32.vlgmr.msra.gmra.mrb[4].mxu1 %v11241_v5 }
 0x252   : > { %9997 = vmatpush3.msra.mxu1 %v8043_v26  ;;  %9998 = vmatprep.mubr.f32.mxu1 %v11239_v15 }
 0x253   : > { %10001 = vmatprep.subr.mxu1 %v7956_v29 }
 0x259   : > { %9999 = vmatmul.mubr.f32.vlgmr.msra.gmra.mrb[4].mxu1 %v11260_v36 }
 0x25a   : > { %10002 = vmatpush3.msra.mxu1 %v7956_v29  ;;  %10003 = vmatprep.mubr.f32.mxu1 %v11257_v17 }
 0x25b   : > { %10006 = vmatprep.subr.mxu1 %v8044_v13 }
 0x261   : > { %10004 = vmatmul.mubr.f32.vlgmr.msra.gmra.mrb[4].mxu1 %v11272_v7  ;;  %v9498_v7 = vpop.permute.xlu0 %9497 }
 0x262   : > { %10007 = vmatpush3.msra.mxu1 %v8044_v13  ;;  %10008 = vmatprep.mubr.f32.mxu1 %v11226_v28 }
 0x263   : > { %10011 = vmatprep.subr.mxu1 %v7956_v29 }
 0x269   : > { %10009 = vmatmul.mubr.f32.vlgmr.msra.gmra.mrb[4].mxu1 %v11241_v5 }
 0x26a   : > { %10012 = vmatpush3.msra.mxu1 %v7956_v29  ;;  %10013 = vmatprep.mubr.f32.mxu1 %v11226_v28 }
 0x26b   : > { %10016 = vmatprep.subr.mxu1 %v8994_v1 }
 0x271   : > { %10014 = vmatmul.mubr.f32.vlgmr.msra.gmra.mrb[4].mxu1 %v11241_v5 }
 0x272   : > { %10017 = vmatpush3.msra.mxu1 %v8994_v1  ;;  %10018 = vmatprep.mubr.f32.mxu1 %v11404_v31 }
 0x273   : > { %10021 = vmatprep.subr.mxu1 %v9084_v22 }
 0x279   : > { %10019 = vmatmul.mubr.f32.vlgmr.msra.gmra.mrb[4].mxu1 %v11418_v6 }
 0x27a   : > { %10022 = vmatpush3.msra.mxu1 %v9084_v22  ;;  %10023 = vmatprep.mubr.f32.mxu1 %v11347_v40 }
 0x27b   : > { %10026 = vmatprep.subr.mxu1 %v9081_v54 }
 0x281   : > { %10024 = vmatmul.mubr.f32.vlgmr.msra.gmra.mrb[4].mxu1 %v11364_v61 }
 0x282   : > { %10027 = vmatpush3.msra.mxu1 %v9081_v54  ;;  %10028 = vmatprep.mubr.f32.mxu1 %v11362_v49 }
 0x283   : > { %10031 = vmatprep.subr.mxu1 %v8994_v1 }
 0x289   : > { %10029 = vmatmul.mubr.f32.vlgmr.msra.gmra.mrb[4].mxu1 %v11384_v25 }
 0x28a   : > { %10032 = vmatpush3.msra.mxu1 %v8994_v1  ;;  %10033 = vmatprep.mubr.f32.mxu1 %v11381_v53 }
 0x28b   : > { %10036 = vmatprep.subr.mxu1 %v9082_v16 }
 0x291   : > { %10034 = vmatmul.mubr.f32.vlgmr.msra.gmra.mrb[4].mxu1 %v11397_v46 }
 0x292   : > { %10037 = vmatpush3.msra.mxu1 %v9082_v16  ;;  %10038 = vmatprep.mubr.f32.mxu1 %v11347_v40 }
 0x293   : > { %10041 = vmatprep.subr.mxu1 %v8994_v1 }
 0x299   : > { %10039 = vmatmul.mubr.f32.vlgmr.msra.gmra.mrb[4].mxu1 %v11364_v61 }
 0x29a   : > { %10042 = vmatpush3.msra.mxu1 %v8994_v1  ;;  %10043 = vmatprep.mubr.f32.mxu1 %v11347_v40 }
 0x2a1   : > { %10044 = vmatmul.mubr.f32.vlgmr.msra.gmra.mrb[4].mxu1 %v11364_v61  ;;  %v9493_v61 = vpop.permute.xlu1 %9492 }
 0x2b0   : > { %v8981_v28 = vpop.f32.mrb[0].mxu0 }
 0x2b1   : > { %v10048_v15 = vadd.f32 %v8981_v28, %v11488_v30  ;;  %v8983_v5 = vpop.f32.mrb[1].mxu0 }
 0x2b2   : > { %v10049_v17 = vadd.f32 %v8983_v5, %v11490_v52 }
 0x2b3   : > { %v9500_v60 = vadd.f32 %v10048_v15, %v9493_v61 }
 0x2b4   : > { %v8988_v36 = vpop.f32.mrb[2].mxu0  ;;  %v9501_v53 = vadd.f32 %v10049_v17, %v9493_v61 }
 0x2b5   : > { %v10050_v37 = vadd.f32 %v8988_v36, %v11494_v21  ;;  %v8990_v33 = vpop.f32.mrb[3].mxu0 }
 0x2b6   : > { %v10051_v4 = vadd.f32 %v8990_v33, %v11496_v10 }
 0x2b7   : > { %v9503_v58 = vadd.f32 %v10050_v37, %v9498_v7 }
 0x2b8   : > { %v9504_v9 = vadd.f32 %v10051_v4, %v9498_v7 }
 0x2b9   : > { %v9609_v20 = vmul.f32 -1.442695, %v9503_v58 }
 0x2ba   : > { %v9610_v40 = vmul.f32 -1.442695, %v9504_v9 }
 0x2bb   : > { %10389 = vpow2.f32 %v9609_v20 }
 0x2bc   : > { %10391 = vpow2.f32 %v9610_v40 }
 0x2c5   : > { %v10390_v39 = vpop.eup %10389 }
 0x2c6   : > { %v10392_v3 = vpop.eup %10391  ;;  %v9515_v51 = vadd.f32 1.0, %v10390_v39 }
 0x2c7   : > { %v9516_v49 = vadd.f32 1.0, %v10392_v3 }
 0x2c8   : > { %10393 = vrcp.f32 %v9515_v51 }
 0x2c9   : > { %10395 = vrcp.f32 %v9516_v49 }
 0x2d2   : > { %v10394_v11 = vpop.eup %10393 }
 0x2d3   : > { %v10396_v25 = vpop.eup %10395  ;;  %v9524_v56 = vmul.f32 %v10394_v11, %v9500_v60 }
 0x2d4   : > { %v9525_v14 = vmul.f32 %v10396_v25, %v9501_v53 }
 0x2d5   : > { %9527 = vst [vmem:[%s170_s19] sm:$0xff] %v9524_v56 }
 0x2d6   : > { %9528 = vst [vmem:[%s170_s19 + $0x8] sm:$0xff] %v9525_v14 }
 0x374   : > { %v10045_v23 = vpop.f32.mrb[4].mxu1 }
 0x375   : > { %v9505_v55 = vadd.f32 %v10045_v23, %v9498_v7  ;;  %v9472_v46 = vpop.f32.mrb[5].mxu1 }
 0x376   : > { %v9502_v44 = vadd.f32 %v9493_v61, %v9472_v46 }
 0x377   : > { %v9611_v41 = vmul.f32 -1.442695, %v9505_v55 }
 0x379   : > { %10397 = vpow2.f32 %v9611_v41 }
 0x383   : > { %v10398_v24 = vpop.eup %10397 }
 0x384   : > { %v9517_v31 = vadd.f32 1.0, %v10398_v24 }
 0x386   : > { %10399 = vrcp.f32 %v9517_v31 }
 0x390   : > { %v10400_v45 = vpop.eup %10399 }
 0x391   : > { %v9526_v63 = vmul.f32 %v10400_v45, %v9502_v44 }
 0x393   : > { %9530 = vst.msk [vmem:[%s170_s19 + $0x10] sm:$0xff] %vm9529_vm10, %v9526_v63 }
 0x394 PF: > { %s13_s12 = sadd.s32 1, %s10407_s12  }
 0x395   : > { %p10_p4 = scmp.ge.s32.totalorder %s13_s12, 4  }
 0x397   :  { %12 = sbr.rel (!%p10_p4) target bundleno = 1 (0x1), region = 70 }

</bundles_post_ra>
